<compile_context>
chip_gen: v7x
topology: tpu7x:2x2x1
jax: 0.10.0
libtpu: 0.0.40
codegen_flags: <defaults>
</compile_context>

<pallas_src>
import functools

import jax
import jax.numpy as jnp
from jax.experimental import pallas as pl
from jax.experimental.pallas import tpu as pltpu

C_STATE = 32            # channels of x / h / c
C_IN = 64               # concat(x, h)
C_GATES = 4 * C_STATE   # 128 : [i | f | g | o]
_LANE_PAD = 128         # halo (>= W) around the flattened spatial axis; a full
                        # lane tile keeps the interior stores 128-aligned.


def _pick_strip(hw):
    """Largest lane strip (multiple of 128) dividing H*W, else the whole image."""
    for s in (256, 128):
        if hw % s == 0:
            return s
    return hw


def _conv_lstm_kernel(x_ref, h_ref, c_ref, w_ref, b_ref,
                      h_out_ref, c_out_ref, xcol_ref,
                      *, width, pad, strip):
    # x_ref, h_ref : (1, 32, HW)   compute dtype (bf16)
    # c_ref        : (1, 32, HW)   f32 previous cell state
    # w_ref        : (3, 128, 192) fused gate weights, w[ky][o, kx*64 + cin]
    # b_ref        : (128, 1)      f32 fused bias
    # h_out, c_out : (1, 32, HW)   f32
    # xcol_ref     : (192, HW + 2*pad) VMEM scratch (kx-im2col buffer)
    hw = x_ref.shape[2]
    cdt = xcol_ref.dtype

    # ------------------------------------------------------------------ #
    # Build the kx-im2col buffer in VMEM:                                 #
    #   xcol[kx*64 + c, pad + r*W + w] = concat(x, h)[c, r, w + kx - 1]   #
    # zero where w + kx - 1 is outside [0, W).  The `pad` lanes of zeros  #
    # on both sides turn the ky (row) taps into plain +-W lane offsets    #
    # into this buffer (rows -1 and H read zeros).                        #
    # ------------------------------------------------------------------ #
    zpad = jnp.zeros((xcol_ref.shape[0], pad), cdt)
    xcol_ref[:, 0:pad] = zpad
    xcol_ref[:, pad + hw:pad + hw + pad] = zpad

    col = jax.lax.broadcasted_iota(jnp.int32, (1, hw), 1) % width
    not_first = col != 0             # w == 0     -> left neighbour is padding
    not_last = col != (width - 1)    # w == W - 1 -> right neighbour is padding

    # The +-1 pixel lane shifts are done on f32 values (plain 32-bit relayout
    # path); results are cast to the MXU dtype on the 128-aligned store.
    xh = jnp.concatenate(
        [x_ref[0].astype(jnp.float32), h_ref[0].astype(jnp.float32)], axis=0)
    zcol = jnp.zeros((C_IN, 1), jnp.float32)
    left = jnp.where(not_first,
                     jnp.concatenate([zcol, xh[:, :hw - 1]], axis=1), 0.0)
    right = jnp.where(not_last,
                      jnp.concatenate([xh[:, 1:], zcol], axis=1), 0.0)
    xcol_ref[0:C_IN, pad:pad + hw] = left.astype(cdt)               # kx = 0
    xcol_ref[C_IN:2 * C_IN, pad:pad + hw] = xh.astype(cdt)          # kx = 1
    xcol_ref[2 * C_IN:3 * C_IN, pad:pad + hw] = right.astype(cdt)   # kx = 2

    # ------------------------------------------------------------------ #
    # 3 K=192 MXU matmuls per lane strip + fused LSTM epilogue.           #
    # (static strip loop: strip count is small and known at trace time)   #
    # ------------------------------------------------------------------ #
    bias = b_ref[...]                                               # (128, 1)
    for p0 in range(0, hw, strip):
        acc = jnp.zeros((C_GATES, strip), jnp.float32)
        for ky in range(3):
            base = pad + p0 + (ky - 1) * width
            src = xcol_ref[:, base:base + strip]                    # (192, S)
            acc += jax.lax.dot_general(
                w_ref[ky], src,
                dimension_numbers=(((1,), (0,)), ((), ())),
                preferred_element_type=jnp.float32)
        acc = acc + bias

        i_g = jax.nn.sigmoid(acc[0 * C_STATE:1 * C_STATE])
        f_g = jax.nn.sigmoid(acc[1 * C_STATE:2 * C_STATE])
        g_g = jnp.tanh(acc[2 * C_STATE:3 * C_STATE])
        o_g = jax.nn.sigmoid(acc[3 * C_STATE:4 * C_STATE])

        c_prev = c_ref[0, :, p0:p0 + strip]
        c_new = f_g * c_prev + i_g * g_g
        h_new = o_g * jnp.tanh(c_new)
        c_out_ref[0, :, p0:p0 + strip] = c_new
        h_out_ref[0, :, p0:p0 + strip] = h_new


@jax.jit
def conv_lstm_forward(x_nchw, h_nchw, c_nchw, w_fused, b_fused):
    """conv_LSTM forward.

    Args:
      x_nchw, h_nchw, c_nchw: [B, 32, H, W] float32 (PyTorch NCHW layout).
      w_fused: [128, 64, 3, 3] fused OIHW conv weight, gate order [i|f|g|o]
               (== torch.cat([conv_i.w, conv_f.w, conv_g.w, conv_o.w], 0)).
      b_fused: [128] fused bias, same gate order.
    Returns:
      (h_new, c_new), each [B, 32, H, W] float32.
    """
    B, C, H, W = x_nchw.shape
    assert C == C_STATE
    HW = H * W

    # bf16 halves the HBM/DMA bytes and doubles MXU rate; in a bf16 model the
    # casts below are no-ops.  Cell state and accumulation stay f32.  (Odd W
    # would place the +-W lane taps at sub-word offsets of packed bf16, so
    # fall back to f32 MXU operands in that corner case.)
    cdt = jnp.bfloat16 if W % 2 == 0 else jnp.float32

    x2 = x_nchw.reshape(B, C_STATE, HW).astype(cdt)     # free reshape + cast
    h2 = h_nchw.reshape(B, C_STATE, HW).astype(cdt)
    c2 = c_nchw.reshape(B, C_STATE, HW)                 # stays f32
    # (O, I, ky, kx) -> (ky, O, kx*64 + I), matching the xcol channel layout.
    wk = jnp.transpose(w_fused, (2, 0, 3, 1)).reshape(3, C_GATES, 3 * C_IN)
    wk = wk.astype(cdt)
    b2 = b_fused.reshape(C_GATES, 1).astype(jnp.float32)

    strip = _pick_strip(HW)
    kernel = functools.partial(
        _conv_lstm_kernel, width=W, pad=_LANE_PAD, strip=strip)

    # Raise the scoped-VMEM limit only when a full-image block needs it
    # (32 MiB default on v6e); cap below v5e/v6e physical VMEM.
    itemsize = jnp.dtype(cdt).itemsize
    vmem_est = (2 * (2 * C_STATE * HW * itemsize + 3 * C_STATE * HW * 4)
                + 3 * C_GATES * 3 * C_IN * itemsize
                + C_GATES * 128 * 4
                + 3 * C_IN * (HW + 2 * _LANE_PAD) * itemsize)
    if vmem_est < (24 << 20):
        cparams = pltpu.CompilerParams(dimension_semantics=("parallel",))
    else:
        cparams = pltpu.CompilerParams(
            dimension_semantics=("parallel",),
            vmem_limit_bytes=min(2 * vmem_est, 96 << 20))
    # TODO(synk): for very large H*W (v7x: 64 MiB VMEM) add a grid axis over
    # row strips with a +-1-row halo (manual DMA / pl.Element index_map)
    # instead of one full image per grid step.

    h_new, c_new = pl.pallas_call(
        kernel,
        out_shape=(jax.ShapeDtypeStruct((B, C_STATE, HW), jnp.float32),
                   jax.ShapeDtypeStruct((B, C_STATE, HW), jnp.float32)),
        grid_spec=pltpu.PrefetchScalarGridSpec(
            num_scalar_prefetch=0,
            grid=(B,),
            in_specs=[
                pl.BlockSpec((1, C_STATE, HW), lambda b: (b, 0, 0)),     # x
                pl.BlockSpec((1, C_STATE, HW), lambda b: (b, 0, 0)),     # h
                pl.BlockSpec((1, C_STATE, HW), lambda b: (b, 0, 0)),     # c
                pl.BlockSpec((3, C_GATES, 3 * C_IN), lambda b: (0, 0, 0)),
                pl.BlockSpec((C_GATES, 1), lambda b: (0, 0)),
            ],
            out_specs=[
                pl.BlockSpec((1, C_STATE, HW), lambda b: (b, 0, 0)),     # h'
                pl.BlockSpec((1, C_STATE, HW), lambda b: (b, 0, 0)),     # c'
            ],
            scratch_shapes=[
                pltpu.VMEM((3 * C_IN, HW + 2 * _LANE_PAD), cdt),         # xcol
            ],
        ),
        compiler_params=cparams,
    )(x2, h2, c2, wk, b2)

    return (h_new.reshape(B, C_STATE, H, W),
            c_new.reshape(B, C_STATE, H, W))


def _reference_forward(x, h, c, w_fused, b_fused):
    """Pure-JAX f32 reference matching the PyTorch module semantics."""
    xh = jnp.concatenate([x, h], axis=1)
    conv = jax.lax.conv_general_dilated(
        xh, w_fused, window_strides=(1, 1), padding=((1, 1), (1, 1)),
        dimension_numbers=("NCHW", "OIHW", "NCHW"))
    conv = conv + b_fused[None, :, None, None]
    i = jax.nn.sigmoid(conv[:, 0 * C_STATE:1 * C_STATE])
    f = jax.nn.sigmoid(conv[:, 1 * C_STATE:2 * C_STATE])
    g = jnp.tanh(conv[:, 2 * C_STATE:3 * C_STATE])
    o = jax.nn.sigmoid(conv[:, 3 * C_STATE:4 * C_STATE])
    c_new = f * c + i * g
    h_new = o * jnp.tanh(c_new)
    return h_new, c_new


if __name__ == "__main__":
    key = jax.random.PRNGKey(0)
    kx, kh, kc, kw, kb = jax.random.split(key, 5)

    B, C, H, W = 2, 32, 16, 16
    x = jax.random.normal(kx, (B, C, H, W), jnp.float32)
    h = jax.random.normal(kh, (B, C, H, W), jnp.float32)
    c = jax.random.normal(kc, (B, C, H, W), jnp.float32)

    # Fused gate parameters (i, f, g, o stacked on the output-channel axis),
    # PyTorch-style OIHW layout and Kaiming-uniform-ish init.
    fan_in = C_IN * 3 * 3
    bound = 1.0 / (fan_in ** 0.5)
    w_fused = jax.random.uniform(kw, (C_GATES, C_IN, 3, 3), jnp.float32,
                                 minval=-bound, maxval=bound)
    b_fused = jax.random.uniform(kb, (C_GATES,), jnp.float32,
                                 minval=-bound, maxval=bound)

    h_new, c_new = conv_lstm_forward(x, h, c, w_fused, b_fused)
    jax.block_until_ready((h_new, c_new))

    h_ref, c_ref = _reference_forward(x, h, c, w_fused, b_fused)
    h_err = float(jnp.max(jnp.abs(h_new - h_ref)))
    c_err = float(jnp.max(jnp.abs(c_new - c_ref)))
    # bf16 MXU operands -> a few 1e-3 of absolute error after the saturating
    # gate nonlinearities; 5e-2 is a comfortable bound.
    assert h_new.shape == (B, C, H, W) and c_new.shape == (B, C, H, W)
    assert h_err < 5e-2, f"h mismatch: max abs err {h_err}"
    assert c_err < 5e-2, f"c mismatch: max abs err {c_err}"

    print("KERNEL_OK")
</pallas_src>

<mosaic_0001>
module attributes {stable_mosaic.version = 11 : i64} {
  func.func @_conv_lstm_kernel(%arg0: i32, %arg1: memref<1x32x256xbf16, #tpu.memory_space<vmem>>, %arg2: memref<1x32x256xbf16, #tpu.memory_space<vmem>>, %arg3: memref<1x32x256xf32, #tpu.memory_space<vmem>>, %arg4: memref<3x128x192xbf16, #tpu.memory_space<vmem>>, %arg5: memref<128x1xf32, #tpu.memory_space<vmem>>, %arg6: memref<1x32x256xf32, #tpu.memory_space<vmem>>, %arg7: memref<1x32x256xf32, #tpu.memory_space<vmem>>, %arg8: memref<192x512xbf16, #tpu.memory_space<vmem>>) attributes {dimension_semantics = [#tpu.dimension_semantics<parallel>], iteration_bounds = array<i64: 2>, scalar_prefetch = 0 : i64, scratch_operands = 1 : i64, tpu.core_type = #tpu.core_type<tc>, window_params = [{transform_indices = @transform_0, window_bounds = array<i64: 1, 32, 256>}, {transform_indices = @transform_1, window_bounds = array<i64: 1, 32, 256>}, {transform_indices = @transform_2, window_bounds = array<i64: 1, 32, 256>}, {pipeline_mode = #tpu.pipeline_mode<synchronous>, transform_indices = @transform_3, window_bounds = array<i64: 3, 128, 192>}, {pipeline_mode = #tpu.pipeline_mode<synchronous>, transform_indices = @transform_4, window_bounds = array<i64: 128, 1>}, {transform_indices = @transform_5, window_bounds = array<i64: 1, 32, 256>}, {transform_indices = @transform_6, window_bounds = array<i64: 1, 32, 256>}]} {
    %cst = arith.constant 0.000000e+00 : bf16
    %0 = vector.broadcast %cst : bf16 to vector<192x128xbf16>
    %c0 = arith.constant 0 : index
    %c0_0 = arith.constant 0 : index
    %1 = vector.load %arg8[%c0, %c0_0] : memref<192x512xbf16, #tpu.memory_space<vmem>>, vector<192x128xbf16>
    tpu.vector_store %arg8[%c0, %c0_0], %0 {strides = array<i32>} : memref<192x512xbf16, #tpu.memory_space<vmem>>, vector<192x128xbf16>,
    %c0_1 = arith.constant 0 : index
    %c384 = arith.constant 384 : index
    %2 = vector.load %arg8[%c0_1, %c384] : memref<192x512xbf16, #tpu.memory_space<vmem>>, vector<192x128xbf16>
    tpu.vector_store %arg8[%c0_1, %c384], %0 {strides = array<i32>} : memref<192x512xbf16, #tpu.memory_space<vmem>>, vector<192x128xbf16>,
    %3 = tpu.iota {dimensions = array<i32: 1>} : vector<1x256xi32>
    %c16_i32 = arith.constant 16 : i32
    %c0_i32 = arith.constant 0 : i32
    %4 = arith.cmpi eq, %c16_i32, %c0_i32 : i32
    %c1_i32 = arith.constant 1 : i32
    %5 = arith.select %4, %c1_i32, %c16_i32 : i32
    %6 = vector.broadcast %5 : i32 to vector<1x256xi32>
    %7 = arith.remsi %3, %6 : vector<1x256xi32>
    %c0_i32_2 = arith.constant 0 : i32
    %8 = vector.broadcast %c0_i32_2 : i32 to vector<1x256xi32>
    %9 = arith.cmpi ne, %7, %8 : vector<1x256xi32>
    %c0_i32_3 = arith.constant 0 : i32
    %10 = vector.broadcast %c0_i32_3 : i32 to vector<1x256xi32>
    %11 = arith.cmpi slt, %7, %10 : vector<1x256xi32>
    %c0_i32_4 = arith.constant 0 : i32
    %12 = arith.cmpi slt, %5, %c0_i32_4 : i32
    %13 = vector.broadcast %12 : i1 to vector<1x256xi1>
    %14 = vector.broadcast %13 : vector<1x256xi1> to vector<1x256xi1>
    %15 = arith.xori %11, %14 : vector<1x256xi1>
    %16 = arith.andi %15, %9 : vector<1x256xi1>
    %17 = vector.broadcast %5 : i32 to vector<1x256xi32>
    %18 = arith.addi %7, %17 : vector<1x256xi32>
    %19 = arith.select %16, %18, %7 : vector<1x256xi1>, vector<1x256xi32>
    %c0_i32_5 = arith.constant 0 : i32
    %20 = vector.broadcast %c0_i32_5 : i32 to vector<1x256xi32>
    %21 = arith.cmpi ne, %19, %20 : vector<1x256xi32>
    %c15_i32 = arith.constant 15 : i32
    %22 = vector.broadcast %c15_i32 : i32 to vector<1x256xi32>
    %23 = arith.cmpi ne, %19, %22 : vector<1x256xi32>
    %c0_6 = arith.constant 0 : index
    %c0_7 = arith.constant 0 : index
    %c0_8 = arith.constant 0 : index
    %24 = vector.load %arg1[%c0_6, %c0_7, %c0_8] : memref<1x32x256xbf16, #tpu.memory_space<vmem>>, vector<1x32x256xbf16>
    %25 = vector.shape_cast %24 : vector<1x32x256xbf16> to vector<32x256xbf16>
    %26 = arith.extf %25 : vector<32x256xbf16> to vector<32x256xf32>
    %c0_9 = arith.constant 0 : index
    %c0_10 = arith.constant 0 : index
    %c0_11 = arith.constant 0 : index
    %27 = vector.load %arg2[%c0_9, %c0_10, %c0_11] : memref<1x32x256xbf16, #tpu.memory_space<vmem>>, vector<1x32x256xbf16>
    %28 = vector.shape_cast %27 : vector<1x32x256xbf16> to vector<32x256xbf16>
    %29 = arith.extf %28 : vector<32x256xbf16> to vector<32x256xf32>
    %30 = tpu.concatenate %26, %29 in 0 : vector<32x256xf32>, vector<32x256xf32> -> vector<64x256xf32>
    %cst_12 = arith.constant 0.000000e+00 : f32
    %31 = vector.broadcast %cst_12 : f32 to vector<64x1xf32>
    %32 = vector.extract_strided_slice %30 {offsets = [0, 0], sizes = [64, 255], strides = [1, 1]} : vector<64x256xf32> to vector<64x255xf32>
    %33 = tpu.concatenate %31, %32 in 1 : vector<64x1xf32>, vector<64x255xf32> -> vector<64x256xf32>
    %cst_13 = arith.constant 0.000000e+00 : f32
    %34 = vector.shape_cast %21 : vector<1x256xi1> to vector<1x256xi1>
    %35 = vector.broadcast %34 : vector<1x256xi1> to vector<64x256xi1>
    %36 = vector.broadcast %cst_13 : f32 to vector<64x256xf32>
    %37 = arith.select %35, %33, %36 : vector<64x256xi1>, vector<64x256xf32>
    %38 = vector.extract_strided_slice %30 {offsets = [0, 1], sizes = [64, 255], strides = [1, 1]} : vector<64x256xf32> to vector<64x255xf32>
    %39 = tpu.concatenate %38, %31 in 1 : vector<64x255xf32>, vector<64x1xf32> -> vector<64x256xf32>
    %cst_14 = arith.constant 0.000000e+00 : f32
    %40 = vector.shape_cast %23 : vector<1x256xi1> to vector<1x256xi1>
    %41 = vector.broadcast %40 : vector<1x256xi1> to vector<64x256xi1>
    %42 = vector.broadcast %cst_14 : f32 to vector<64x256xf32>
    %43 = arith.select %41, %39, %42 : vector<64x256xi1>, vector<64x256xf32>
    %44 = arith.truncf %37 : vector<64x256xf32> to vector<64x256xbf16>
    %c0_15 = arith.constant 0 : index
    %c128 = arith.constant 128 : index
    %45 = vector.load %arg8[%c0_15, %c128] : memref<192x512xbf16, #tpu.memory_space<vmem>>, vector<64x256xbf16>
    tpu.vector_store %arg8[%c0_15, %c128], %44 {strides = array<i32>} : memref<192x512xbf16, #tpu.memory_space<vmem>>, vector<64x256xbf16>,
    %46 = arith.truncf %30 : vector<64x256xf32> to vector<64x256xbf16>
    %c64 = arith.constant 64 : index
    %c128_16 = arith.constant 128 : index
    %47 = vector.load %arg8[%c64, %c128_16] : memref<192x512xbf16, #tpu.memory_space<vmem>>, vector<64x256xbf16>
    tpu.vector_store %arg8[%c64, %c128_16], %46 {strides = array<i32>} : memref<192x512xbf16, #tpu.memory_space<vmem>>, vector<64x256xbf16>,
    %48 = arith.truncf %43 : vector<64x256xf32> to vector<64x256xbf16>
    %c128_17 = arith.constant 128 : index
    %c128_18 = arith.constant 128 : index
    %49 = vector.load %arg8[%c128_17, %c128_18] : memref<192x512xbf16, #tpu.memory_space<vmem>>, vector<64x256xbf16>
    tpu.vector_store %arg8[%c128_17, %c128_18], %48 {strides = array<i32>} : memref<192x512xbf16, #tpu.memory_space<vmem>>, vector<64x256xbf16>,
    %c0_19 = arith.constant 0 : index
    %c0_20 = arith.constant 0 : index
    %50 = vector.load %arg5[%c0_19, %c0_20] : memref<128x1xf32, #tpu.memory_space<vmem>>, vector<128x1xf32>
    %cst_21 = arith.constant 0.000000e+00 : f32
    %51 = vector.broadcast %cst_21 : f32 to vector<128x256xf32>
    %c0_22 = arith.constant 0 : index
    %c112 = arith.constant 112 : index
    %52 = vector.load %arg8[%c0_22, %c112] : memref<192x512xbf16, #tpu.memory_space<vmem>>, vector<192x256xbf16>
    %c0_23 = arith.constant 0 : index
    %c0_24 = arith.constant 0 : index
    %c0_25 = arith.constant 0 : index
    %53 = vector.load %arg4[%c0_23, %c0_24, %c0_25] : memref<3x128x192xbf16, #tpu.memory_space<vmem>>, vector<1x128x192xbf16>
    %54 = vector.shape_cast %53 : vector<1x128x192xbf16> to vector<128x192xbf16>
    %cst_26 = arith.constant dense<0.000000e+00> : vector<128x256xf32>
    %55 = tpu.matmul %54, %52, %cst_26 {dimension_numbers = #tpu.dot_dimension_numbers<[1], [0], [0], [1], [0, 0, 1, 1], [], []>} : vector<128x192xbf16>, vector<192x256xbf16>, vector<128x256xf32> -> vector<128x256xf32>
    %56 = arith.addf %51, %55 : vector<128x256xf32>
    %c0_27 = arith.constant 0 : index
    %c128_28 = arith.constant 128 : index
    %57 = vector.load %arg8[%c0_27, %c128_28] : memref<192x512xbf16, #tpu.memory_space<vmem>>, vector<192x256xbf16>
    %c1 = arith.constant 1 : index
    %c0_29 = arith.constant 0 : index
    %c0_30 = arith.constant 0 : index
    %58 = vector.load %arg4[%c1, %c0_29, %c0_30] : memref<3x128x192xbf16, #tpu.memory_space<vmem>>, vector<1x128x192xbf16>
    %59 = vector.shape_cast %58 : vector<1x128x192xbf16> to vector<128x192xbf16>
    %cst_31 = arith.constant dense<0.000000e+00> : vector<128x256xf32>
    %60 = tpu.matmul %59, %57, %cst_31 {dimension_numbers = #tpu.dot_dimension_numbers<[1], [0], [0], [1], [0, 0, 1, 1], [], []>} : vector<128x192xbf16>, vector<192x256xbf16>, vector<128x256xf32> -> vector<128x256xf32>
    %61 = arith.addf %56, %60 : vector<128x256xf32>
    %c0_32 = arith.constant 0 : index
    %c144 = arith.constant 144 : index
    %62 = vector.load %arg8[%c0_32, %c144] : memref<192x512xbf16, #tpu.memory_space<vmem>>, vector<192x256xbf16>
    %c2 = arith.constant 2 : index
    %c0_33 = arith.constant 0 : index
    %c0_34 = arith.constant 0 : index
    %63 = vector.load %arg4[%c2, %c0_33, %c0_34] : memref<3x128x192xbf16, #tpu.memory_space<vmem>>, vector<1x128x192xbf16>
    %64 = vector.shape_cast %63 : vector<1x128x192xbf16> to vector<128x192xbf16>
    %cst_35 = arith.constant dense<0.000000e+00> : vector<128x256xf32>
    %65 = tpu.matmul %64, %62, %cst_35 {dimension_numbers = #tpu.dot_dimension_numbers<[1], [0], [0], [1], [0, 0, 1, 1], [], []>} : vector<128x192xbf16>, vector<192x256xbf16>, vector<128x256xf32> -> vector<128x256xf32>
    %66 = arith.addf %61, %65 : vector<128x256xf32>
    %67 = vector.broadcast %50 : vector<128x1xf32> to vector<128x256xf32>
    %68 = arith.addf %66, %67 : vector<128x256xf32>
    %69 = vector.extract_strided_slice %68 {offsets = [0, 0], sizes = [32, 256], strides = [1, 1]} : vector<128x256xf32> to vector<32x256xf32>
    %70 = arith.negf %69 : vector<32x256xf32>
    %71 = math.exp %70 : vector<32x256xf32>
    %cst_36 = arith.constant 1.000000e+00 : f32
    %72 = vector.broadcast %cst_36 : f32 to vector<32x256xf32>
    %73 = arith.addf %72, %71 : vector<32x256xf32>
    %74 = arith.divf %72, %73 : vector<32x256xf32>
    %75 = vector.extract_strided_slice %68 {offsets = [32, 0], sizes = [32, 256], strides = [1, 1]} : vector<128x256xf32> to vector<32x256xf32>
    %76 = arith.negf %75 : vector<32x256xf32>
    %77 = math.exp %76 : vector<32x256xf32>
    %cst_37 = arith.constant 1.000000e+00 : f32
    %78 = vector.broadcast %cst_37 : f32 to vector<32x256xf32>
    %79 = arith.addf %78, %77 : vector<32x256xf32>
    %80 = arith.divf %78, %79 : vector<32x256xf32>
    %81 = vector.extract_strided_slice %68 {offsets = [64, 0], sizes = [32, 256], strides = [1, 1]} : vector<128x256xf32> to vector<32x256xf32>
    %82 = math.tanh %81 : vector<32x256xf32>
    %83 = vector.extract_strided_slice %68 {offsets = [96, 0], sizes = [32, 256], strides = [1, 1]} : vector<128x256xf32> to vector<32x256xf32>
    %84 = arith.negf %83 : vector<32x256xf32>
    %85 = math.exp %84 : vector<32x256xf32>
    %cst_38 = arith.constant 1.000000e+00 : f32
    %86 = vector.broadcast %cst_38 : f32 to vector<32x256xf32>
    %87 = arith.addf %86, %85 : vector<32x256xf32>
    %88 = arith.divf %86, %87 : vector<32x256xf32>
    %c0_39 = arith.constant 0 : index
    %c0_40 = arith.constant 0 : index
    %c0_41 = arith.constant 0 : index
    %89 = vector.load %arg3[%c0_39, %c0_40, %c0_41] : memref<1x32x256xf32, #tpu.memory_space<vmem>>, vector<1x32x256xf32>
    %90 = vector.shape_cast %89 : vector<1x32x256xf32> to vector<32x256xf32>
    %91 = arith.mulf %80, %90 : vector<32x256xf32>
    %92 = arith.mulf %74, %82 : vector<32x256xf32>
    %93 = arith.addf %91, %92 : vector<32x256xf32>
    %94 = math.tanh %93 : vector<32x256xf32>
    %95 = arith.mulf %88, %94 : vector<32x256xf32>
    %c0_42 = arith.constant 0 : index
    %c0_43 = arith.constant 0 : index
    %c0_44 = arith.constant 0 : index
    %96 = vector.load %arg7[%c0_42, %c0_43, %c0_44] : memref<1x32x256xf32, #tpu.memory_space<vmem>>, vector<1x32x256xf32>
    %97 = vector.shape_cast %96 : vector<1x32x256xf32> to vector<32x256xf32>
    %98 = vector.shape_cast %93 : vector<32x256xf32> to vector<1x32x256xf32>
    tpu.vector_store %arg7[%c0_42, %c0_43, %c0_44], %98 {strides = array<i32>} : memref<1x32x256xf32, #tpu.memory_space<vmem>>, vector<1x32x256xf32>,
    %c0_45 = arith.constant 0 : index
    %c0_46 = arith.constant 0 : index
    %c0_47 = arith.constant 0 : index
    %99 = vector.load %arg6[%c0_45, %c0_46, %c0_47] : memref<1x32x256xf32, #tpu.memory_space<vmem>>, vector<1x32x256xf32>
    %100 = vector.shape_cast %99 : vector<1x32x256xf32> to vector<32x256xf32>
    %101 = vector.shape_cast %95 : vector<32x256xf32> to vector<1x32x256xf32>
    tpu.vector_store %arg6[%c0_45, %c0_46, %c0_47], %101 {strides = array<i32>} : memref<1x32x256xf32, #tpu.memory_space<vmem>>, vector<1x32x256xf32>,
    return
  }
  func.func @transform_0(%arg0: i32) -> (i32, i32, i32) {
    %c0_i32 = arith.constant 0 : i32
    %c0_i32_0 = arith.constant 0 : i32
    %c0_i32_1 = arith.constant 0 : i32
    return %arg0, %c0_i32, %c0_i32_0 : i32, i32, i32
  }
  func.func @transform_1(%arg0: i32) -> (i32, i32, i32) {
    %c0_i32 = arith.constant 0 : i32
    %c0_i32_0 = arith.constant 0 : i32
    %c0_i32_1 = arith.constant 0 : i32
    return %arg0, %c0_i32, %c0_i32_0 : i32, i32, i32
  }
  func.func @transform_2(%arg0: i32) -> (i32, i32, i32) {
    %c0_i32 = arith.constant 0 : i32
    %c0_i32_0 = arith.constant 0 : i32
    %c0_i32_1 = arith.constant 0 : i32
    return %arg0, %c0_i32, %c0_i32_0 : i32, i32, i32
  }
  func.func @transform_3(%arg0: i32) -> (i32, i32, i32) {
    %c0_i32 = arith.constant 0 : i32
    %c0_i32_0 = arith.constant 0 : i32
    %c0_i32_1 = arith.constant 0 : i32
    %c0_i32_2 = arith.constant 0 : i32
    return %c0_i32, %c0_i32_0, %c0_i32_1 : i32, i32, i32
  }
  func.func @transform_4(%arg0: i32) -> (i32, i32) {
    %c0_i32 = arith.constant 0 : i32
    %c0_i32_0 = arith.constant 0 : i32
    %c0_i32_1 = arith.constant 0 : i32
    return %c0_i32, %c0_i32_0 : i32, i32
  }
  func.func @transform_5(%arg0: i32) -> (i32, i32, i32) {
    %c0_i32 = arith.constant 0 : i32
    %c0_i32_0 = arith.constant 0 : i32
    %c0_i32_1 = arith.constant 0 : i32
    return %arg0, %c0_i32, %c0_i32_0 : i32, i32, i32
  }
  func.func @transform_6(%arg0: i32) -> (i32, i32, i32) {
    %c0_i32 = arith.constant 0 : i32
    %c0_i32_0 = arith.constant 0 : i32
    %c0_i32_1 = arith.constant 0 : i32
    return %arg0, %c0_i32, %c0_i32_0 : i32, i32, i32
  }
}

</mosaic_0001>

<bundles_post_ra>
// kernel: conv_lstm_forward.1
= control target key start
LH: loop header
LB: loop body
LE: loop exit
PB: predicated region body
PF: predicated region fallthrough
CT: control target
= control target key end

     0   :  { %s2871_s21 = smov 0   ;;  %s3741_s0 = inlined_call_operand.vmem [shape: bf16[2,32,256], index: 0, kind: input, shape index: {}]   ;;  %s3742_s1 = inlined_call_operand.vmem [shape: bf16[2,32,256], index: 1, kind: input, shape index: {}]   ;;  %s3743_s2 = inlined_call_operand.vmem [shape: f32[2,32,256], index: 2, kind: input, shape index: {}]   ;;  %s3744_s3 = inlined_call_operand.vmem [shape: bf16[3,128,192], index: 3, kind: input, shape index: {}]   ;;  %s3745_s4 = inlined_call_operand.vmem [shape: f32[128,1], index: 4, kind: input, shape index: {}]   ;;  %s3746_s5 = inlined_call_operand.vmem [shape: f32[2,32,256], index: 5, kind: output, shape index: {0}]   ;;  %s3747_s6 = inlined_call_operand.vmem [shape: f32[2,32,256], index: 6, kind: output, shape index: {1}]  }
   0x1 LB: > { %s2171_s22 = sadd.s32 4294967295, %s2829_s21   ;;  %p2175_p0 = scmp.ge.s32.totalorder %s2829_s21, 1  ;;  %s2829_s21 = sphi %s2871_s21, %s17_s21  }
   0x2   : > { %p235_p1 = scmp.lt.s32.totalorder %s2829_s21, 3 }
   0x4   : > { %p236_p2 = pnand %p2175_p0, %p235_p1 }
   0x5   : > { %p280_p3 = scmp.lt.s32.totalorder (!%p236_p2), %s2171_s22, 1  ;;  %v2831_v0 = vmov (!%p236_p2), 0   ;;  %s2832_s30 = smov (!%p236_p2), 1   ;;  %v330_v41 = vlaneseq (!%p236_p2)  ;;  %vm433_vm0 = vcmask (!%p236_p2), 7168   ;;  %vm518_vm5 = vcmask (!%p236_p2), 1039360  }
   0x6   : > { %239 = sbr.rel (%p236_p2) target bundleno = 682 (0x2aa), region = 40  ;;  %2613 = vset.pattern.permute.xlu1 (!%p236_p2), %v2831_v0  ;;  %2614 = vset.pattern.permute.xlu0 (!%p236_p2), %v2831_v0  ;;  %s2833_s7 = smov (!%p236_p2), 127   ;;  %vm776_vm10 = vcmask (!%p236_p2), 523264   ;;  %vm1094_vm11 = vcmask (!%p236_p2), 130048   ;;  %vm1513_vm12 = vcmask (!%p236_p2), 916480  }
   0x7   : > { %s2834_s8 = smov (!%p236_p2), 16   ;;  %v2918_v42 = vand.u32 (!%p236_p2), 127, %v330_v41  ;;  %s2835_s17 = smov (!%p236_p2), 112  }
   0x9   : > { %v2921_v43 = vadd.s32 (!%p236_p2), 128, %v2918_v42  ;;  %v337_v44 = vand.u32 (!%p236_p2), 15, %v2918_v42 }
   0xb   : > { %v344_v47 = vand.u32 (!%p236_p2), 15, %v2921_v43  ;;  %vm2927_vm1 = vcmp.ne.s32.totalorder (!%p236_p2), %v337_v44, 0  ;;  %vm3069_vm7 = vcmp.ne.s32.totalorder (!%p236_p2), %v337_v44, 15 }
   0xc   : > { %vm2971_vm4 = vmpackc.low (!%p236_p2), %vm2927_vm1, %vm2927_vm1 }
   0xd   : > { %s3765_s22 = smov (!%p280_p3, %s2171_s22), 1  ;;  %vm2936_vm2 = vcmp.ne.s32.totalorder %v344_v47, 0  ;;  %vm3058_vm6 = vcmp.ne.s32.totalorder %v344_v47, 15  ;;  %vm3126_vm9 = vmpackc.low %vm3069_vm7, %vm3069_vm7 }
   0xe   : > { %s2324_s23 = sshll.u32 %s3765_s22, 5  ;;  %vm2958_vm3 = vmpackc.low %vm2936_vm2, %vm2936_vm2 }
   0xf   : > { %s284_s26 = scalar_lea.vmem %s3741_s0, %s2324_s23  ;;  %s289_s29 = scalar_lea.vmem %s3742_s1, %s2324_s23  ;;  %vm3101_vm8 = vmpackc.low %vm3058_vm6, %vm3058_vm6 }
  0x10   : > { %v363_v1 = vld [vmem:[%s284_s26 + $0x10] sm:$0xff]  ;;  %v361_v2 = vld [vmem:[%s284_s26] sm:$0xff]  ;;  %v364_v3 = vld [vmem:[%s284_s26 + $0x18] sm:$0xff] }
  0x11   : > { %v369_v4 = vunpack.c.l.bf16 %v363_v1  ;;  %v370_v5 = vunpack.c.h.bf16 %v363_v1  ;;  %v365_v6 = vunpack.c.l.bf16 %v361_v2  ;;  %v366_v7 = vunpack.c.h.bf16 %v361_v2  ;;  %v362_v8 = vld [vmem:[%s284_s26 + $0x8] sm:$0xff]  ;;  %v373_v14 = vld [vmem:[%s289_s29] sm:$0xff]  ;;  %v376_v17 = vld [vmem:[%s289_s29 + $0x18] sm:$0xff] }
  0x12   : > { %v374_v9 = vld [vmem:[%s289_s29 + $0x8] sm:$0xff]  ;;  %v371_v10 = vunpack.c.l.bf16 %v364_v3  ;;  %v372_v11 = vunpack.c.h.bf16 %v364_v3  ;;  %v367_v12 = vunpack.c.l.bf16 %v362_v8  ;;  %v368_v13 = vunpack.c.h.bf16 %v362_v8  ;;  %v375_v20 = vld [vmem:[%s289_s29 + $0x10] sm:$0xff] }
  0x13   : > { %v2488_v15 = vpack.i.bf16 %v370_v5, %v369_v4  ;;  %v2478_v16 = vpack.i.bf16 %v366_v7, %v365_v6  ;;  %v379_v18 = vunpack.c.l.bf16 %v374_v9  ;;  %v380_v19 = vunpack.c.h.bf16 %v374_v9 }
  0x14   : > { %v2493_v21 = vpack.i.bf16 %v372_v11, %v371_v10  ;;  %v2483_v22 = vpack.i.bf16 %v368_v13, %v367_v12  ;;  %v377_v23 = vunpack.c.l.bf16 %v373_v14  ;;  %v378_v24 = vunpack.c.h.bf16 %v373_v14 }
  0x15   : > { %2489 = vrot.lane.b32.xlu1 %v2488_v15, %s2832_s30  ;;  %2479 = vrot.lane.b32.xlu0 %v2478_v16, %s2832_s30  ;;  %v2503_v25 = vpack.i.bf16 %v380_v19, %v379_v18  ;;  %v383_v26 = vunpack.c.l.bf16 %v376_v17  ;;  %v384_v28 = vunpack.c.h.bf16 %v376_v17  ;;  %v381_v29 = vunpack.c.l.bf16 %v375_v20 }
  0x16   : > { %v2498_v27 = vpack.i.bf16 %v378_v24, %v377_v23  ;;  %v382_v30 = vunpack.c.h.bf16 %v375_v20  ;;  %v2890_v33 = vcombine.high %v363_v1, %v364_v3  ;;  %v2892_v34 = vcombine.low %v373_v14, %v374_v9 }
  0x17   : > { %v2513_v31 = vpack.i.bf16 %v384_v28, %v383_v26  ;;  %v2894_v35 = vcombine.high %v373_v14, %v374_v9  ;;  %v2896_v36 = vcombine.low %v375_v20, %v376_v17  ;;  %v2898_v37 = vcombine.high %v375_v20, %v376_v17 }
  0x18   : > { %v2508_v32 = vpack.i.bf16 %v382_v30, %v381_v29  ;;  %v2902_v38 = vcombine.low %v361_v2, %v362_v8  ;;  %v2906_v39 = vcombine.high %v361_v2, %v362_v8  ;;  %v2912_v40 = vcombine.low %v363_v1, %v364_v3 }
  0x19   : > { %2494 = vrot.lane.b32.xlu1 %v2493_v21, %s2832_s30  ;;  %2484 = vrot.lane.b32.xlu0 %v2483_v22, %s2832_s30 }
  0x1d   : > { %2504 = vrot.lane.b32.xlu1 %v2503_v25, %s2832_s30  ;;  %2499 = vrot.lane.b32.xlu0 %v2498_v27, %s2832_s30 }
  0x21   : > { %2514 = vrot.lane.b32.xlu1 %v2513_v31, %s2832_s30  ;;  %2509 = vrot.lane.b32.xlu0 %v2508_v32, %s2832_s30  ;;  %s3672_s30 = sshll.u32 %s3765_s22, 6 }
  0x22   : > { %s3699_s11 = scalar_lea.vmem %s3747_s6, %s3672_s30  ;;  %s3716_s14 = scalar_lea.vmem %s3746_s5, %s3672_s30 }
  0x25   : > { %2524 = vrot.lane.b32.xlu1 %v2483_v22, %s2833_s7  ;;  %2519 = vrot.lane.b32.xlu0 %v2478_v16, %s2833_s7 }
  0x29   : > { %2534 = vrot.lane.b32.xlu1 %v2493_v21, %s2833_s7  ;;  %2529 = vrot.lane.b32.xlu0 %v2488_v15, %s2833_s7 }
  0x2d   : > { %2544 = vrot.lane.b32.xlu1 %v2503_v25, %s2833_s7  ;;  %2539 = vrot.lane.b32.xlu0 %v2498_v27, %s2833_s7 }
  0x31   : > { %2554 = vrot.lane.b32.xlu1 %v2513_v31, %s2833_s7  ;;  %2549 = vrot.lane.b32.xlu0 %v2508_v32, %s2833_s7 }
  0x35   : > { %2559 = vrot.lane.b32.xlu0 %v2831_v0, %s2834_s8  ;;  %2564 = vrot.lane.b32.xlu1 %v2831_v0, %s2834_s8 }
  0x39   : > { %1048 = vrot.lane.b32.xlu0 %v2902_v38, %s2834_s8  ;;  %1050 = vrot.lane.b32.xlu1 %v2906_v39, %s2834_s8 }
  0x3d   : > { %2569 = vrot.lane.b32.xlu0 %v2831_v0, %s2834_s8  ;;  %1054 = vrot.lane.b32.xlu1 %v2912_v40, %s2834_s8 }
  0x87   : > { %v2490_v45 = vpop.permute.xlu1 %2489  ;;  %v2480_v46 = vpop.permute.xlu0 %2479 }
  0x88   : > { %v2492_v48 = vunpack.i.h.bf16 %v2490_v45  ;;  %v2491_v49 = vunpack.i.l.bf16 %v2490_v45  ;;  %v2482_v50 = vunpack.i.h.bf16 %v2480_v46  ;;  %v2481_v51 = vunpack.i.l.bf16 %v2480_v46 }
  0x8a   : > { %v460_v53 = vsel %vm433_vm0, 0.0, %v2491_v49  ;;  %v458_v54 = vsel %vm433_vm0, 0.0, %v2481_v51  ;;  %v436_v55 = vsel %vm433_vm0, %v2491_v49, %v2492_v48  ;;  %v434_v59 = vsel %vm433_vm0, %v2481_v51, %v2482_v50 }
  0x8b   : > { %v2495_v56 = vpop.permute.xlu1 %2494  ;;  %v2485_v57 = vpop.permute.xlu0 %2484  ;;  %v474_v1 = vsel %vm2927_vm1, %v460_v53, 0.0  ;;  %v470_v2 = vsel %vm2927_vm1, %v458_v54, 0.0  ;;  %v471_v6 = vsel %vm2936_vm2, %v434_v59, 0.0  ;;  %v475_v13 = vsel %vm2936_vm2, %v436_v55, 0.0 }
  0x8c   : > { %v2497_v60 = vunpack.i.h.bf16 %v2495_v56  ;;  %v2496_v61 = vunpack.i.l.bf16 %v2495_v56  ;;  %v2487_v62 = vunpack.i.h.bf16 %v2485_v57  ;;  %v2486_v63 = vunpack.i.l.bf16 %v2485_v57 }
  0x8e   : > { %v461_v3 = vsel %vm433_vm0, 0.0, %v2496_v61  ;;  %v459_v4 = vsel %vm433_vm0, 0.0, %v2486_v63  ;;  %v435_v5 = vsel %vm433_vm0, %v2486_v63, %v2487_v62  ;;  %v437_v7 = vsel %vm433_vm0, %v2496_v61, %v2497_v60 }
  0x8f   : > { %v476_v8 = vsel %vm2927_vm1, %v461_v3, 0.0  ;;  %v472_v9 = vsel %vm2927_vm1, %v459_v4, 0.0  ;;  %v2505_v11 = vpop.permute.xlu1 %2504  ;;  %v2500_v12 = vpop.permute.xlu0 %2499  ;;  %v473_v14 = vsel %vm2936_vm2, %v435_v5, 0.0  ;;  %v2330_v15 = vpack.c.bf16 %v435_v5, %v434_v59 }
  0x90   : > { %v2966_v16 = vpack.c.bf16 %v472_v9, %v470_v2  ;;  %v2333_v18 = vpack.c.bf16 %v459_v4, %v458_v54  ;;  %v2975_v19 = vpack.c.bf16 %v473_v14, %v471_v6  ;;  %v2507_v20 = vunpack.i.h.bf16 %v2505_v11 }
  0x91   : > { %v2506_v21 = vunpack.i.l.bf16 %v2505_v11  ;;  %v2502_v22 = vunpack.i.h.bf16 %v2500_v12  ;;  %v2336_v23 = vpack.c.bf16 %v437_v7, %v436_v55  ;;  %v2339_v24 = vpack.c.bf16 %v461_v3, %v460_v53  ;;  %2331 = vmatprep.subr.msk.bf16.mxu1 %vm2958_vm3, %v2330_v15 }
  0x92   : > { %1024 = vrot.lane.b32.xlu0 %v2966_v16, %s2834_s8  ;;  %v2501_v25 = vunpack.i.l.bf16 %v2500_v12  ;;  %v477_v26 = vsel %vm2936_vm2, %v437_v7, 0.0  ;;  %2334 = vmatpush1.bf16.msk.msra.mxu1 %vm2971_vm4, %v2333_v18  ;;  %v2991_v30 = vpack.c.bf16 %v476_v8, %v474_v1 }
  0x93   : > { %1026 = vrot.lane.b32.xlu1 %v2975_v19, %s2834_s8  ;;  %v439_v27 = vsel %vm433_vm0, %v2506_v21, %v2507_v20  ;;  %v463_v28 = vsel %vm433_vm0, 0.0, %v2506_v21  ;;  %v2989_v29 = vpack.c.bf16 %v477_v26, %v475_v13  ;;  %v2515_v31 = vpop.permute.xlu1 %2514  ;;  %v2510_v32 = vpop.permute.xlu0 %2509  ;;  %2337 = vmatprep.subr.msk.bf16.mxu1 %vm2958_vm3, %v2336_v23 }
  0x94   : > { %v480_v41 = vsel %vm2927_vm1, %v463_v28, 0.0  ;;  %v438_v45 = vsel %vm433_vm0, %v2501_v25, %v2502_v22  ;;  %v462_v46 = vsel %vm433_vm0, 0.0, %v2501_v25  ;;  %v2517_v48 = vunpack.i.h.bf16 %v2515_v31 }
  0x95   : > { %v478_v49 = vsel %vm2927_vm1, %v462_v46, 0.0  ;;  %v2342_v50 = vpack.c.bf16 %v439_v27, %v438_v45  ;;  %v2345_v51 = vpack.c.bf16 %v463_v28, %v462_v46  ;;  %v2516_v53 = vunpack.i.l.bf16 %v2515_v31 }
  0x96   : > { %1032 = vrot.lane.b32.xlu0 %v2989_v29, %s2834_s8  ;;  %v2512_v54 = vunpack.i.h.bf16 %v2510_v32  ;;  %v2511_v55 = vunpack.i.l.bf16 %v2510_v32  ;;  %v479_v56 = vsel %vm2936_vm2, %v438_v45, 0.0  ;;  %v481_v57 = vsel %vm2936_vm2, %v439_v27, 0.0  ;;  %2340 = vmatpush1.bf16.msk.msra.mxu1 %vm2971_vm4, %v2339_v24 }
  0x97   : > { %1030 = vrot.lane.b32.xlu1 %v2991_v30, %s2834_s8  ;;  %v441_v59 = vsel %vm433_vm0, %v2516_v53, %v2517_v48  ;;  %v465_v60 = vsel %vm433_vm0, 0.0, %v2516_v53  ;;  %v3013_v61 = vpack.c.bf16 %v481_v57, %v479_v56  ;;  %v3015_v62 = vpack.c.bf16 %v480_v41, %v478_v49  ;;  %2343 = vmatprep.subr.msk.bf16.mxu1 %vm2958_vm3, %v2342_v50  ;;  %v2525_v52 = vpop.permute.xlu1 %2524  ;;  %v2520_v11 = vpop.permute.xlu0 %2519 }
  0x98   : > { %v484_v63 = vsel %vm2927_vm1, %v465_v60, 0.0  ;;  %v440_v1 = vsel %vm433_vm0, %v2511_v55, %v2512_v54  ;;  %v464_v2 = vsel %vm433_vm0, 0.0, %v2511_v55  ;;  %v485_v3 = vsel %vm2936_vm2, %v441_v59, 0.0 }
  0x99   : > { %v482_v4 = vsel %vm2927_vm1, %v464_v2, 0.0  ;;  %v2348_v5 = vpack.c.bf16 %v441_v59, %v440_v1  ;;  %v483_v6 = vsel %vm2936_vm2, %v440_v1, 0.0  ;;  %v2351_v8 = vpack.c.bf16 %v465_v60, %v464_v2 }
  0x9a   : > { %1038 = vrot.lane.b32.xlu0 %v3013_v61, %s2834_s8  ;;  %v3031_v7 = vpack.c.bf16 %v484_v63, %v482_v4  ;;  %2346 = vmatpush1.bf16.msk.msra.mxu1 %vm2971_vm4, %v2345_v51  ;;  %v3037_v9 = vpack.c.bf16 %v485_v3, %v483_v6  ;;  %v2527_v13 = vunpack.i.h.bf16 %v2525_v52  ;;  %v2522_v10 = vunpack.i.h.bf16 %v2520_v11 }
  0x9b   : > { %1036 = vrot.lane.b32.xlu1 %v3015_v62, %s2834_s8  ;;  %2349 = vmatprep.subr.msk.bf16.mxu1 %vm2958_vm3, %v2348_v5  ;;  %v2535_v58 = vpop.permute.xlu1 %2534  ;;  %v2530_v12 = vpop.permute.xlu0 %2529  ;;  %v2526_v14 = vunpack.i.l.bf16 %v2525_v52  ;;  %v2521_v15 = vunpack.i.l.bf16 %v2520_v11 }
  0x9c   : > { %v544_v18 = vsel %vm518_vm5, %v2527_v13, 0.0  ;;  %v2537_v20 = vunpack.i.h.bf16 %v2535_v58  ;;  %v2532_v21 = vunpack.i.h.bf16 %v2530_v12  ;;  %v543_v22 = vsel %vm518_vm5, %v2522_v10, 0.0 }
  0x9d   : > { %v2536_v24 = vunpack.i.l.bf16 %v2535_v58  ;;  %v2531_v25 = vunpack.i.l.bf16 %v2530_v12  ;;  %v519_v26 = vsel %vm518_vm5, %v2521_v15, %v2522_v10  ;;  %v520_v27 = vsel %vm518_vm5, %v2526_v14, %v2527_v13 }
  0x9e   : > { %1042 = vrot.lane.b32.xlu0 %v3031_v7, %s2834_s8  ;;  %2352 = vmatpush1.bf16.msk.msra.mxu1 %vm2971_vm4, %v2351_v8  ;;  %v558_v28 = vsel %vm3058_vm6, %v544_v18, 0.0  ;;  %v556_v42 = vsel %vm3058_vm6, %v543_v22, 0.0  ;;  %v546_v44 = vsel %vm518_vm5, %v2537_v20, 0.0  ;;  %v545_v31 = vsel %vm518_vm5, %v2532_v21, 0.0 }
  0x9f   : > { %1044 = vrot.lane.b32.xlu1 %v3037_v9, %s2834_s8  ;;  %809 = vmatprep.subr.bf16.mxu1 %v2906_v39  ;;  %v2545_v43 = vpop.permute.xlu1 %2544  ;;  %v2540_v47 = vpop.permute.xlu0 %2539  ;;  %v555_v41 = vsel %vm3069_vm7, %v519_v26, 0.0  ;;  %v557_v45 = vsel %vm3069_vm7, %v520_v27, 0.0  ;;  %v2354_v49 = vpack.c.bf16 %v544_v18, %v543_v22  ;;  %v522_v50 = vsel %vm518_vm5, %v2536_v24, %v2537_v20 }
  0xa0   : > { %v2547_v32 = vunpack.i.h.bf16 %v2545_v43  ;;  %v2542_v46 = vunpack.i.h.bf16 %v2540_v47  ;;  %v2541_v48 = vunpack.i.l.bf16 %v2540_v47  ;;  %v521_v51 = vsel %vm518_vm5, %v2531_v25, %v2532_v21 }
  0xa1   : > { %v562_v53 = vsel %vm3058_vm6, %v546_v44, 0.0  ;;  %v560_v54 = vsel %vm3058_vm6, %v545_v31, 0.0  ;;  %v2360_v55 = vpack.c.bf16 %v546_v44, %v545_v31  ;;  %v2546_v57 = vunpack.i.l.bf16 %v2545_v43  ;;  %v2628_v44 = vld [vmem:[%s3744_s3 + $0x4] ss:$8 sps:$4 sm:$0xff]  }
  0xa2   : > { %1056 = vrot.lane.b32.xlu0 %v2890_v33, %s2834_s8  ;;  %810 = vmatpush1.bf16.msra.mxu1 %v2902_v38  ;;  %v3107_v63 = vpack.c.bf16 %v557_v45, %v555_v41  ;;  %v2357_v1 = vpack.c.bf16 %v520_v27, %v519_v26  ;;  %v3109_v2 = vpack.c.bf16 %v558_v28, %v556_v42  ;;  %v548_v3 = vsel %vm518_vm5, %v2547_v32, 0.0  ;;  %v2625_v26 = vld [vmem:[%s3744_s3 + $0x84] ss:$8 sps:$4 sm:$0xff]  }
  0xa3   : > { %1060 = vrot.lane.b32.xlu1 %v2892_v34, %s2834_s8  ;;  %811 = vmatprep.subr.bf16.mxu1 %v2890_v33  ;;  %v2555_v59 = vpop.permute.xlu1 %2554  ;;  %v2550_v60 = vpop.permute.xlu0 %2549  ;;  %v547_v4 = vsel %vm518_vm5, %v2542_v46, 0.0  ;;  %v523_v5 = vsel %vm518_vm5, %v2541_v48, %v2542_v46  ;;  %v559_v6 = vsel %vm3069_vm7, %v521_v51, 0.0  ;;  %v561_v8 = vsel %vm3069_vm7, %v522_v50, 0.0 }
  0xa4   : > { %v2557_v11 = vunpack.i.h.bf16 %v2555_v59  ;;  %v2556_v58 = vunpack.i.l.bf16 %v2555_v59  ;;  %v2552_v12 = vunpack.i.h.bf16 %v2550_v60  ;;  %v2551_v13 = vunpack.i.l.bf16 %v2550_v60  ;;  %2226 = vmatprep.mubr.msk.bf16.mxu1 %vm776_vm10, %v2625_v26  ;;  %2250 = vmatprep.mubr.msk.bf16.mxu0 %vm776_vm10, %v2628_v44 }
  0xa5   : > { %v524_v10 = vsel %vm518_vm5, %v2546_v57, %v2547_v32  ;;  %v2363_v14 = vpack.c.bf16 %v522_v50, %v521_v51  ;;  %v566_v15 = vsel %vm3058_vm6, %v548_v3, 0.0  ;;  %v3135_v18 = vpack.c.bf16 %v562_v53, %v560_v54  ;;  %v2623_v51 = vld [vmem:[%s3744_s3 + $0x80] ss:$8 sps:$4 sm:$0xff]   ;;  %v2629_v53 = vld [vmem:[%s3744_s3 + $0x94] ss:$8 sps:$4 sm:$0xff]  }
  0xa6   : > { %1062 = vrot.lane.b32.xlu0 %v2894_v35, %s2834_s8  ;;  %812 = vmatpush1.bf16.msra.mxu1 %v2912_v40  ;;  %v564_v20 = vsel %vm3058_vm6, %v547_v4, 0.0  ;;  %v2366_v21 = vpack.c.bf16 %v548_v3, %v547_v4  ;;  %v3143_v22 = vpack.c.bf16 %v561_v8, %v559_v6  ;;  %v563_v43 = vsel %vm3069_vm7, %v523_v5, 0.0  ;;  %v2631_v54 = vld [vmem:[%s3744_s3 + $0x90] ss:$8 sps:$4 sm:$0xff]  }
  0xa7   : > { %2574 = vrot.lane.b32.xlu1 %v2831_v0, %s2834_s8  ;;  %813 = vmatprep.subr.bf16.mxu1 %v2894_v35  ;;  %v565_v47 = vsel %vm3069_vm7, %v524_v10, 0.0  ;;  %v525_v24 = vsel %vm518_vm5, %v2551_v13, %v2552_v12  ;;  %v526_v25 = vsel %vm518_vm5, %v2556_v58, %v2557_v11  ;;  %v550_v27 = vsel %vm518_vm5, %v2557_v11, 0.0 }
  0xa8   : > { %v549_v28 = vsel %vm518_vm5, %v2552_v12, 0.0  ;;  %v3160_v42 = vpack.c.bf16 %v566_v15, %v564_v20  ;;  %v2369_v31 = vpack.c.bf16 %v524_v10, %v523_v5  ;;  %v3170_v32 = vpack.c.bf16 %v565_v47, %v563_v43  ;;  %v619_v10 = vld [vmem:[%s3745_s4] sm:$0xff] }
  0xa9   : > { %v567_v41 = vsel %vm3069_vm7, %v525_v24, 0.0  ;;  %v569_v45 = vsel %vm3069_vm7, %v526_v25, 0.0  ;;  %v570_v46 = vsel %vm3058_vm6, %v550_v27, 0.0  ;;  %v568_v48 = vsel %vm3058_vm6, %v549_v28, 0.0  ;;  %v623_v43 = vld [vmem:[%s3745_s4 + $0x20] sm:$0xff] }
  0xaa   : > { %1066 = vrot.lane.b32.xlu0 %v2896_v36, %s2834_s8  ;;  %814 = vmatpush1.bf16.msra.mxu1 %v2892_v34  ;;  %v3185_v50 = vpack.c.bf16 %v569_v45, %v567_v41  ;;  %v2375_v23 = vpack.c.bf16 %v526_v25, %v525_v24  ;;  %v3191_v17 = vpack.c.bf16 %v570_v46, %v568_v48  ;;  %v624_v45 = vld [vmem:[%s3745_s4 + $0x28] sm:$0xff]  ;;  %v627_v46 = vld [vmem:[%s3745_s4 + $0x40] sm:$0xff] }
  0xab   : > { %1068 = vrot.lane.b32.xlu1 %v2898_v37, %s2834_s8  ;;  %815 = vmatprep.subr.bf16.mxu1 %v2898_v37 }
  0xae   : > { %2579 = vrot.lane.b32.xlu0 %v2831_v0, %s2834_s8  ;;  %816 = vmatpush1.bf16.msra.mxu1 %v2896_v36 }
  0xaf   : > { %2584 = vrot.lane.b32.xlu1 %v2831_v0, %s2834_s8  ;;  %2355 = vmatprep.subr.msk.bf16.mxu1 %vm3101_vm8, %v2354_v49  ;;  %v2372_v49 = vpack.c.bf16 %v550_v27, %v549_v28  ;;  %v622_v27 = vld [vmem:[%s3745_s4 + $0x18] sm:$0xff]  ;;  %v625_v28 = vld [vmem:[%s3745_s4 + $0x30] sm:$0xff] }
  0xb2   : > { %1072 = vrot.lane.b32.xlu0 %v3107_v63, %s2834_s8  ;;  %2358 = vmatpush1.bf16.msk.msra.mxu1 %vm3126_vm9, %v2357_v1 }
  0xb3   : > { %1074 = vrot.lane.b32.xlu1 %v3109_v2, %s2834_s8  ;;  %2361 = vmatprep.subr.msk.bf16.mxu1 %vm3101_vm8, %v2360_v55  ;;  %v2635_v55 = vld [vmem:[%s3744_s3 + $0xa4] ss:$8 sps:$4 sm:$0xff]  }
  0xb6   : > { %1080 = vrot.lane.b32.xlu0 %v3135_v18, %s2834_s8  ;;  %2364 = vmatpush1.bf16.msk.msra.mxu1 %vm3126_vm9, %v2363_v14  ;;  %v620_v14 = vld [vmem:[%s3745_s4 + $0x8] sm:$0xff] }
  0xb7   : > { %1078 = vrot.lane.b32.xlu1 %v3143_v22, %s2834_s8  ;;  %2367 = vmatprep.subr.msk.bf16.mxu1 %vm3101_vm8, %v2366_v21  ;;  %v621_v21 = vld [vmem:[%s3745_s4 + $0x10] sm:$0xff] }
  0xba   : > { %1086 = vrot.lane.b32.xlu0 %v3160_v42, %s2834_s8  ;;  %2370 = vmatpush1.bf16.msk.msra.mxu1 %vm3126_vm9, %v2369_v31 }
  0xbb   : > { %1084 = vrot.lane.b32.xlu1 %v3170_v32, %s2834_s8  ;;  %2373 = vmatprep.subr.msk.bf16.mxu1 %vm3101_vm8, %v2372_v49 }
  0xbe   : > { %1090 = vrot.lane.b32.xlu0 %v3185_v50, %s2834_s8  ;;  %2376 = vmatpush1.bf16.msk.msra.mxu1 %vm3126_vm9, %v2375_v23 }
  0xbf   : > { %1092 = vrot.lane.b32.xlu1 %v3191_v17, %s2834_s8  ;;  %s3686_s8 = scalar_lea.vmem %s3743_s2, %s3672_s30 }
  0xc1   : > { %834 = vmatmul.mubr.bf16.vlgmr.msra.gmra.mrb[0].mxu1 %v2623_v51  ;;  %v626_v51 = vld [vmem:[%s3745_s4 + $0x38] sm:$0xff] }
  0xc2   : > { %2594 = vrot.lane.b32.xlu0 %v2831_v0, %s2835_s17  ;;  %2227 = vmatprep.mubr.msk.bf16.mxu1 %vm776_vm10, %v2629_v53  ;;  %v629_v53 = vld [vmem:[%s3745_s4 + $0x50] sm:$0xff] }
  0xc3   : > { %2589 = vrot.lane.b32.xlu1 %v2831_v0, %s2835_s17 }
  0xc6   : > { %1467 = vrot.lane.b32.xlu0 %v2906_v39, %s2835_s17  ;;  %v2637_v39 = vld [vmem:[%s3744_s3 + $0xa0] ss:$8 sps:$4 sm:$0xff]  }
  0xc7   : > { %2599 = vrot.lane.b32.xlu1 %v2831_v0, %s2835_s17 }
  0xc9   : > { %844 = vmatmul.mubr.bf16.gmra.mrb[4].mxu1 %v2631_v54 }
  0xca   : > { %1465 = vrot.lane.b32.xlu0 %v2902_v38, %s2835_s17  ;;  %2228 = vmatprep.mubr.msk.bf16.mxu1 %vm776_vm10, %v2635_v55  ;;  %v2641_v38 = vld [vmem:[%s3744_s3 + $0xb4] ss:$8 sps:$4 sm:$0xff]  }
  0xcb   : > { %1473 = vrot.lane.b32.xlu1 %v2890_v33, %s2835_s17  ;;  %v2643_v33 = vld [vmem:[%s3744_s3 + $0xb0] ss:$8 sps:$4 sm:$0xff]  }
  0xce   : > { %1443 = vrot.lane.b32.xlu0 %v2975_v19, %s2835_s17  ;;  %v2649_v19 = vld [vmem:[%s3744_s3 + $0xc0] ss:$8 sps:$4 sm:$0xff]  }
  0xcf   : > { %1449 = vrot.lane.b32.xlu1 %v2989_v29, %s2835_s17  ;;  %v2653_v29 = vld [vmem:[%s3744_s3 + $0xd4] ss:$8 sps:$4 sm:$0xff]  }
  0xd1   : > { %854 = vmatmul.mubr.bf16.gmra.mrb[8].mxu1 %v2637_v39 }
  0xd2   : > { %1441 = vrot.lane.b32.xlu0 %v2966_v16, %s2835_s17  ;;  %2229 = vmatprep.mubr.msk.bf16.mxu1 %vm776_vm10, %v2641_v38  ;;  %v2647_v16 = vld [vmem:[%s3744_s3 + $0xc4] ss:$8 sps:$4 sm:$0xff]  }
  0xd3   : > { %1455 = vrot.lane.b32.xlu1 %v3013_v61, %s2835_s17  ;;  %v2667_v61 = vld [vmem:[%s3744_s3 + $0xf0] ss:$8 sps:$4 sm:$0xff]  }
  0xd6   : > { %1447 = vrot.lane.b32.xlu0 %v2991_v30, %s2835_s17  ;;  %v2560_v30 = vpop.permute.xlu0 %2559 }
  0xd7   : > { %1453 = vrot.lane.b32.xlu1 %v3015_v62, %s2835_s17  ;;  %v2673_v62 = vld [vmem:[%s3744_s3 + $0x144] ss:$8 sps:$4 sm:$0xff]   ;;  %v2561_v59 = vunpack.i.l.bf16 %v2560_v30  ;;  %v2562_v3 = vunpack.i.h.bf16 %v2560_v30 }
  0xd9   : > { %864 = vmatmul.mubr.bf16.gmra.mrb[12].mxu1 %v2643_v33 }
  0xda   : > { %1461 = vrot.lane.b32.xlu0 %v3037_v9, %s2835_s17  ;;  %2230 = vmatprep.mubr.msk.bf16.mxu1 %vm776_vm10, %v2647_v16  ;;  %v1049_v9 = vpop.permute.xlu0 %1048  ;;  %v628_v16 = vld [vmem:[%s3745_s4 + $0x48] sm:$0xff] }
  0xdb   : > { %1459 = vrot.lane.b32.xlu1 %v3031_v7, %s2835_s17 }
  0xde   : > { %1471 = vrot.lane.b32.xlu0 %v2912_v40, %s2835_s17  ;;  %v2659_v40 = vld [vmem:[%s3744_s3 + $0xe4] ss:$8 sps:$4 sm:$0xff]   ;;  %v2570_v57 = vpop.permute.xlu0 %2569 }
  0xdf   : > { %1479 = vrot.lane.b32.xlu1 %v2894_v35, %s2835_s17  ;;  %v2655_v35 = vld [vmem:[%s3744_s3 + $0xd0] ss:$8 sps:$4 sm:$0xff]   ;;  %v2571_v47 = vunpack.i.l.bf16 %v2570_v57 }
  0xe1   : > { %874 = vmatmul.mubr.bf16.gmra.mrb[16].mxu1 %v2649_v19  ;;  %v1103_v44 = vsel %vm1094_vm11, %v2571_v47, %v1049_v9  ;;  %v631_v19 = vld [vmem:[%s3745_s4 + $0x60] sm:$0xff] }
  0xe2   : > { %2604 = vrot.lane.b32.xlu0 %v2831_v0, %s2835_s17  ;;  %2231 = vmatprep.mubr.msk.bf16.mxu1 %vm776_vm10, %v2653_v29 }
  0xe3   : > { %1477 = vrot.lane.b32.xlu1 %v2892_v34, %s2835_s17  ;;  %v2661_v34 = vld [vmem:[%s3744_s3 + $0xe0] ss:$8 sps:$4 sm:$0xff]  }
  0xe6   : > { %1485 = vrot.lane.b32.xlu0 %v2898_v37, %s2835_s17  ;;  %v2565_v37 = vpop.permute.xlu1 %2564 }
  0xe7   : > { %1483 = vrot.lane.b32.xlu1 %v2896_v36, %s2835_s17  ;;  %v2665_v36 = vld [vmem:[%s3744_s3 + $0xf4] ss:$8 sps:$4 sm:$0xff]   ;;  %v2566_v8 = vunpack.i.l.bf16 %v2565_v37  ;;  %v2567_v13 = vunpack.i.h.bf16 %v2565_v37 }
  0xe8   : > { %v630_v37 = vld [vmem:[%s3745_s4 + $0x58] sm:$0xff] }
  0xe9   : > { %884 = vmatmul.mubr.bf16.gmra.mrb[20].mxu1 %v2655_v35 }
  0xea   : > { %1491 = vrot.lane.b32.xlu0 %v3109_v2, %s2835_s17  ;;  %2232 = vmatprep.mubr.msk.bf16.mxu1 %vm776_vm10, %v2659_v40  ;;  %v1051_v7 = vpop.permute.xlu1 %1050 }
  0xeb   : > { %2609 = vrot.lane.b32.xlu1 %v2831_v0, %s2835_s17  ;;  %v1104_v25 = vsel %vm1094_vm11, %v1049_v9, %v1051_v7 }
  0xee   : > { %1489 = vrot.lane.b32.xlu0 %v3107_v63, %s2835_s17  ;;  %v1055_v56 = vpop.permute.xlu1 %1054 }
  0xef   : > { %1497 = vrot.lane.b32.xlu1 %v3135_v18, %s2835_s17 }
  0xf1   : > { %894 = vmatmul.mubr.bf16.gmra.mrb[24].mxu1 %v2661_v34 }
  0xf2   : > { %1495 = vrot.lane.b32.xlu0 %v3143_v22, %s2835_s17  ;;  %2233 = vmatprep.mubr.msk.bf16.mxu1 %vm776_vm10, %v2665_v36 }
  0xf3   : > { %1503 = vrot.lane.b32.xlu1 %v3160_v42, %s2835_s17  ;;  %v2572_v42 = vunpack.i.h.bf16 %v2570_v57 }
  0xf5   : > { %v1105_v49 = vsel %vm1094_vm11, %v2572_v42, %v1055_v56 }
  0xf6   : > { %1505 = vrot.lane.b32.xlu0 %v2831_v0, %s2835_s17 }
  0xf7   : > { %1501 = vrot.lane.b32.xlu1 %v3170_v32, %s2835_s17 }
  0xf9   : > { %904 = vmatmul.mubr.bf16.gmra.mrb[28].mxu1 %v2667_v61  ;;  %v633_v61 = vld [vmem:[%s3745_s4 + $0x70] sm:$0xff] }
  0xfa   : > { %1509 = vrot.lane.b32.xlu0 %v3191_v17, %s2835_s17  ;;  %2294 = vmatprep.mubr.msk.bf16.mxu1 %vm776_vm10, %v2673_v62 }
  0xfb   : > { %1511 = vrot.lane.b32.xlu1 %v2831_v0, %s2835_s17 }
  0xfe   : > { %1507 = vrot.lane.b32.xlu0 %v3185_v50, %s2835_s17 }
  0xff   : > { %1733 = vperm.xlu1 %2613, %v619_v10  }
 0x102   : > { %1738 = vperm.xlu0 %2614, %v620_v14  }
 0x103   : > { %1743 = vperm.xlu1 %2613, %v621_v21  }
 0x104   : > { %v1025_v60 = vpop.permute.xlu0 %1024 }
 0x105   : > { %v1027_v63 = vpop.permute.xlu1 %1026  ;;  %v1095_v1 = vsel %vm1094_vm11, %v2561_v59, %v1025_v60 }
 0x106   : > { %v1096_v2 = vsel %vm1094_vm11, %v1025_v60, %v1027_v63  ;;  %1753 = vperm.xlu0 %2614, %v623_v43  }
 0x107   : > { %1167 = vmatprep.subr.bf16.mxu0 %v1096_v2  ;;  %1748 = vperm.xlu1 %2613, %v622_v27   ;;  %v634_v2 = vld [vmem:[%s3745_s4 + $0x78] sm:$0xff] }
 0x108   : > { %1168 = vmatpush1.bf16.msra.mxu0 %v1095_v1  ;;  %v1033_v4 = vpop.permute.xlu0 %1032 }
 0x109   : > { %v1031_v0 = vpop.permute.xlu1 %1030 }
 0x10a   : > { %v1098_v5 = vsel %vm1094_vm11, %v1031_v0, %v1033_v4  ;;  %v1097_v6 = vsel %vm1094_vm11, %v2562_v3, %v1031_v0  ;;  %1763 = vperm.xlu0 %2614, %v625_v28   ;;  %v2644_v28 = vld [vmem:[%s3744_s3 + $0x34] ss:$8 sps:$4 sm:$0xff]  }
 0x10b   : > { %1169 = vmatprep.subr.bf16.mxu0 %v1098_v5  ;;  %1758 = vperm.xlu1 %2613, %v624_v45  }
 0x10c   : > { %1170 = vmatpush1.bf16.msra.mxu0 %v1097_v6  ;;  %v1039_v52 = vpop.permute.xlu0 %1038 }
 0x10d   : > { %v1037_v11 = vpop.permute.xlu1 %1036 }
 0x10e   : > { %v1100_v58 = vsel %vm1094_vm11, %v1037_v11, %v1039_v52  ;;  %v1099_v12 = vsel %vm1094_vm11, %v2566_v8, %v1037_v11  ;;  %1773 = vperm.xlu0 %2614, %v627_v46   ;;  %v2626_v11 = vld [vmem:[%s3744_s3] ss:$8 sps:$4 sm:$0xff]  }
 0x10f   : > { %1171 = vmatprep.subr.bf16.mxu0 %v1100_v58  ;;  %1768 = vperm.xlu1 %2613, %v626_v51  }
 0x110   : > { %1172 = vmatpush1.bf16.msra.mxu0 %v1099_v12  ;;  %v1043_v15 = vpop.permute.xlu0 %1042  ;;  %v2632_v12 = vld [vmem:[%s3744_s3 + $0x14] ss:$8 sps:$4 sm:$0xff]  }
 0x111   : > { %v1045_v18 = vpop.permute.xlu1 %1044  ;;  %v1101_v20 = vsel %vm1094_vm11, %v2567_v13, %v1043_v15 }
 0x112   : > { %v1102_v22 = vsel %vm1094_vm11, %v1043_v15, %v1045_v18  ;;  %1783 = vperm.xlu0 %2614, %v629_v53   ;;  %v2634_v15 = vld [vmem:[%s3744_s3 + $0x10] ss:$8 sps:$4 sm:$0xff]  }
 0x113   : > { %1173 = vmatprep.subr.bf16.mxu0 %v1102_v22  ;;  %1778 = vperm.xlu1 %2613, %v628_v16  }
 0x114   : > { %1174 = vmatpush1.bf16.msra.mxu0 %v1101_v20  ;;  %v1057_v24 = vpop.permute.xlu0 %1056  ;;  %v2638_v20 = vld [vmem:[%s3744_s3 + $0x24] ss:$8 sps:$4 sm:$0xff]  }
 0x115   : > { %1175 = vmatprep.subr.bf16.mxu0 %v1104_v25  ;;  %v1061_v26 = vpop.permute.xlu1 %1060  ;;  %v1106_v32 = vsel %vm1094_vm11, %v1055_v56, %v1057_v24  ;;  %v632_v56 = vld [vmem:[%s3745_s4 + $0x68] sm:$0xff] }
 0x116   : > { %1793 = vperm.xlu0 %2614, %v631_v19   ;;  %v2640_v25 = vld [vmem:[%s3744_s3 + $0x20] ss:$8 sps:$4 sm:$0xff]  }
 0x117   : > { %1788 = vperm.xlu1 %2613, %v630_v37  }
 0x118   : > { %1176 = vmatpush1.bf16.msra.mxu0 %v1103_v44  ;;  %v1063_v31 = vpop.permute.xlu0 %1062 }
 0x119   : > { %1177 = vmatprep.subr.bf16.mxu0 %v1106_v32  ;;  %v2575_v41 = vpop.permute.xlu1 %2574  ;;  %v1108_v23 = vsel %vm1094_vm11, %v1061_v26, %v1063_v31 }
 0x11a   : > { %v2576_v48 = vunpack.i.l.bf16 %v2575_v41  ;;  %v2577_v38 = vunpack.i.h.bf16 %v2575_v41  ;;  %1803 = vperm.xlu0 %2614, %v633_v61  }
 0x11b   : > { %1798 = vperm.xlu1 %2613, %v632_v56  }
 0x11c   : > { %1178 = vmatpush1.bf16.msra.mxu0 %v1105_v49  ;;  %v1067_v50 = vpop.permute.xlu0 %1066  ;;  %v1107_v54 = vsel %vm1094_vm11, %v2576_v48, %v1061_v26 }
 0x11d   : > { %1179 = vmatprep.subr.bf16.mxu0 %v1108_v23  ;;  %v1069_v17 = vpop.permute.xlu1 %1068  ;;  %v1109_v35 = vsel %vm1094_vm11, %v2577_v38, %v1067_v50 }
 0x11e   : > { %v1110_v39 = vsel %vm1094_vm11, %v1067_v50, %v1069_v17  ;;  %v2646_v50 = vld [vmem:[%s3744_s3 + $0x30] ss:$8 sps:$4 sm:$0xff]   ;;  %v2650_v17 = vld [vmem:[%s3744_s3 + $0x44] ss:$8 sps:$4 sm:$0xff]  }
 0x11f   : > { %1808 = vperm.xlu1 %2613, %v634_v2  }
 0x120   : > { %1180 = vmatpush1.bf16.msra.mxu0 %v1107_v54  ;;  %v2580_v55 = vpop.permute.xlu0 %2579 }
 0x121   : > { %v2585_v33 = vpop.permute.xlu1 %2584  ;;  %1181 = vmatprep.subr.bf16.mxu0 %v1110_v39  ;;  %v2581_v29 = vunpack.i.l.bf16 %v2580_v55  ;;  %v2582_v62 = vunpack.i.h.bf16 %v2580_v55 }
 0x122   : > { %v2586_v60 = vunpack.i.l.bf16 %v2585_v33  ;;  %v2587_v0 = vunpack.i.h.bf16 %v2585_v33 }
 0x124   : > { %1182 = vmatpush1.bf16.msra.mxu0 %v1109_v35  ;;  %v1073_v40 = vpop.permute.xlu0 %1072 }
 0x125   : > { %v1075_v34 = vpop.permute.xlu1 %1074  ;;  %v1111_v36 = vsel %vm1094_vm11, %v2581_v29, %v1073_v40  ;;  %v2652_v29 = vld [vmem:[%s3744_s3 + $0x40] ss:$8 sps:$4 sm:$0xff]  }
 0x126   : > { %v1112_v30 = vsel %vm1094_vm11, %v1073_v40, %v1075_v34  ;;  %v2656_v40 = vld [vmem:[%s3744_s3 + $0x54] ss:$8 sps:$4 sm:$0xff]  }
 0x127   : > { %1183 = vmatprep.subr.bf16.mxu0 %v1112_v30 }
 0x128   : > { %1184 = vmatpush1.bf16.msra.mxu0 %v1111_v36  ;;  %v1081_v7 = vpop.permute.xlu0 %1080 }
 0x129   : > { %v1079_v9 = vpop.permute.xlu1 %1078 }
 0x12a   : > { %v1114_v57 = vsel %vm1094_vm11, %v1079_v9, %v1081_v7  ;;  %v1113_v59 = vsel %vm1094_vm11, %v2582_v62, %v1079_v9 }
 0x12b   : > { %1185 = vmatprep.subr.bf16.mxu0 %v1114_v57  ;;  %v2658_v57 = vld [vmem:[%s3744_s3 + $0x50] ss:$8 sps:$4 sm:$0xff]  }
 0x12c   : > { %1186 = vmatpush1.bf16.msra.mxu0 %v1113_v59  ;;  %v1087_v63 = vpop.permute.xlu0 %1086 }
 0x12d   : > { %v1085_v1 = vpop.permute.xlu1 %1084 }
 0x12e   : > { %v1116_v3 = vsel %vm1094_vm11, %v1085_v1, %v1087_v63  ;;  %v1115_v4 = vsel %vm1094_vm11, %v2586_v60, %v1085_v1  ;;  %v2662_v60 = vld [vmem:[%s3744_s3 + $0x64] ss:$8 sps:$4 sm:$0xff]  }
 0x12f   : > { %1187 = vmatprep.subr.bf16.mxu0 %v1116_v3 }
 0x130   : > { %1188 = vmatpush1.bf16.msra.mxu0 %v1115_v4  ;;  %v1091_v5 = vpop.permute.xlu0 %1090 }
 0x131   : > { %v1093_v6 = vpop.permute.xlu1 %1092  ;;  %v1117_v8 = vsel %vm1094_vm11, %v2587_v0, %v1091_v5 }
 0x132   : > { %v1118_v52 = vsel %vm1094_vm11, %v1091_v5, %v1093_v6 }
 0x133   : > { %1189 = vmatprep.subr.bf16.mxu0 %v1118_v52  ;;  %v2664_v52 = vld [vmem:[%s3744_s3 + $0x60] ss:$8 sps:$4 sm:$0xff]  }
 0x134   : > { %1190 = vmatpush1.bf16.msra.mxu0 %v1117_v8  ;;  %v2595_v58 = vpop.permute.xlu0 %2594 }
 0x135   : > { %v2590_v13 = vpop.permute.xlu1 %2589  ;;  %v2596_v32 = vunpack.i.l.bf16 %v2595_v58  ;;  %v2597_v49 = vunpack.i.h.bf16 %v2595_v58  ;;  %v2668_v58 = vld [vmem:[%s3744_s3 + $0x74] ss:$8 sps:$4 sm:$0xff]  }
 0x136   : > { %v2591_v22 = vunpack.i.l.bf16 %v2590_v13  ;;  %v2592_v26 = vunpack.i.h.bf16 %v2590_v13 }
 0x137   : > { %1200 = vmatmul.mubr.bf16.vlgmr.msra.gmra.mrb[0].mxu0 %v2626_v11 }
 0x138   : > { %v3397_v10 = vpop.permute.xlu0 %1467  ;;  %2251 = vmatprep.mubr.msk.bf16.mxu0 %vm776_vm10, %v2632_v12 }
 0x139   : > { %v3400_v14 = vpop.permute.xlu1 %2599 }
 0x13a   : > { %v2601_v55 = vunpack.i.l.bf16 %v3400_v14  ;;  %v2602_v16 = vunpack.i.h.bf16 %v3400_v14 }
 0x13c   : > { %v1466_v18 = vpop.permute.xlu0 %1465  ;;  %v1523_v19 = vsel %vm1513_vm12, %v3397_v10, %v2601_v55 }
 0x13d   : > { %v3408_v21 = vpop.permute.xlu1 %1473  ;;  %v1522_v34 = vsel %vm1513_vm12, %v1466_v18, %v3397_v10 }
 0x13e   : > { %v1525_v30 = vsel %vm1513_vm12, %v3408_v21, %v2602_v16 }
 0x13f   : > { %1210 = vmatmul.mubr.bf16.gmra.mrb[4].mxu0 %v2634_v15 }
 0x140   : > { %v1444_v43 = vpop.permute.xlu0 %1443  ;;  %2252 = vmatprep.mubr.msk.bf16.mxu0 %vm776_vm10, %v2638_v20 }
 0x141   : > { %v1450_v47 = vpop.permute.xlu1 %1449  ;;  %v1515_v24 = vsel %vm1513_vm12, %v1444_v43, %v2591_v22 }
 0x142   : > { %1586 = vmatprep.subr.bf16.mxu0 %v1515_v24  ;;  %2377 = vmatprep.subr.bf16.mxu1 %v1515_v24  ;;  %v1517_v31 = vsel %vm1513_vm12, %v1450_v47, %v2592_v26 }
 0x144   : > { %v1442_v27 = vpop.permute.xlu0 %1441 }
 0x145   : > { %v1514_v42 = vsel %vm1513_vm12, %v1442_v27, %v1444_v43  ;;  %v1456_v44 = vpop.permute.xlu1 %1455  ;;  %v2676_v43 = vld [vmem:[%s3744_s3 + $0x104] ss:$8 sps:$4 sm:$0xff]  }
 0x146   : > { %1587 = vmatpush1.bf16.msra.mxu0 %v1514_v42  ;;  %2389 = vmatpush1.bf16.msra.mxu1 %v1514_v42  ;;  %v1519_v48 = vsel %vm1513_vm12, %v1456_v44, %v2596_v32  ;;  %v2677_v42 = vld [vmem:[%s3744_s3 + $0x154] ss:$8 sps:$4 sm:$0xff]   ;;  %v2681_v32 = vld [vmem:[%s3744_s3 + $0x150] ss:$8 sps:$4 sm:$0xff]  }
 0x147   : > { %1220 = vmatmul.mubr.bf16.gmra.mrb[8].mxu0 %v2640_v25  ;;  %1588 = vmatprep.subr.bf16.mxu0 %v1517_v31 }
 0x148   : > { %2378 = vmatprep.subr.bf16.mxu1 %v1517_v31  ;;  %v1448_v41 = vpop.permute.xlu0 %1447  ;;  %2253 = vmatprep.mubr.msk.bf16.mxu0 %vm776_vm10, %v2644_v28  ;;  %v2671_v28 = vld [vmem:[%s3744_s3 + $0x140] ss:$8 sps:$4 sm:$0xff]   ;;  %v2679_v31 = vld [vmem:[%s3744_s3 + $0x114] ss:$8 sps:$4 sm:$0xff]  }
 0x149   : > { %v1516_v45 = vsel %vm1513_vm12, %v1448_v41, %v1450_v47  ;;  %v1454_v46 = vpop.permute.xlu1 %1453  ;;  %v2683_v41 = vld [vmem:[%s3744_s3 + $0x164] ss:$8 sps:$4 sm:$0xff]  }
 0x14a   : > { %1589 = vmatpush1.bf16.msra.mxu0 %v1516_v45  ;;  %2390 = vmatpush1.bf16.msra.mxu1 %v1516_v45  ;;  %v1518_v51 = vsel %vm1513_vm12, %v1454_v46, %v1456_v44  ;;  %v2674_v44 = vld [vmem:[%s3744_s3 + $0x100] ss:$8 sps:$4 sm:$0xff]   ;;  %v2682_v45 = vld [vmem:[%s3744_s3 + $0x110] ss:$8 sps:$4 sm:$0xff]   ;;  %v2685_v46 = vld [vmem:[%s3744_s3 + $0x124] ss:$8 sps:$4 sm:$0xff]  }
 0x14b   : > { %1590 = vmatprep.subr.bf16.mxu0 %v1519_v48  ;;  %2379 = vmatprep.subr.bf16.mxu1 %v1519_v48  ;;  %v2687_v48 = vld [vmem:[%s3744_s3 + $0x160] ss:$8 sps:$4 sm:$0xff]  }
 0x14c   : > { %v1462_v23 = vpop.permute.xlu0 %1461 }
 0x14d   : > { %v1460_v53 = vpop.permute.xlu1 %1459  ;;  %v1521_v54 = vsel %vm1513_vm12, %v1462_v23, %v2597_v49  ;;  %v2689_v49 = vld [vmem:[%s3744_s3 + $0x174] ss:$8 sps:$4 sm:$0xff]  }
 0x14e   : > { %1591 = vmatpush1.bf16.msra.mxu0 %v1518_v51  ;;  %2391 = vmatpush1.bf16.msra.mxu1 %v1518_v51  ;;  %v1520_v38 = vsel %vm1513_vm12, %v1460_v53, %v1462_v23  ;;  %v2691_v23 = vld [vmem:[%s3744_s3 + $0x134] ss:$8 sps:$4 sm:$0xff]   ;;  %v2694_v51 = vld [vmem:[%s3744_s3 + $0x130] ss:$8 sps:$4 sm:$0xff]  }
 0x14f   : > { %1230 = vmatmul.mubr.bf16.gmra.mrb[12].mxu0 %v2646_v50  ;;  %1592 = vmatprep.subr.bf16.mxu0 %v1521_v54  ;;  %v2688_v50 = vld [vmem:[%s3744_s3 + $0x120] ss:$8 sps:$4 sm:$0xff]  }
 0x150   : > { %2380 = vmatprep.subr.bf16.mxu1 %v1521_v54  ;;  %v1472_v39 = vpop.permute.xlu0 %1471  ;;  %2254 = vmatprep.mubr.msk.bf16.mxu0 %vm776_vm10, %v2650_v17  ;;  %v2693_v17 = vld [vmem:[%s3744_s3 + $0x170] ss:$8 sps:$4 sm:$0xff]  }
 0x151   : > { %v1480_v33 = vpop.permute.xlu1 %1479  ;;  %v1524_v62 = vsel %vm1513_vm12, %v1472_v39, %v3408_v21  ;;  %v2670_v21 = vld [vmem:[%s3744_s3 + $0x70] ss:$8 sps:$4 sm:$0xff]  }
 0x152   : > { %1593 = vmatpush1.bf16.msra.mxu0 %v1520_v38  ;;  %2392 = vmatpush1.bf16.msra.mxu1 %v1520_v38 }
 0x153   : > { %1594 = vmatprep.subr.bf16.mxu0 %v1523_v19  ;;  %2381 = vmatprep.subr.bf16.mxu1 %v1523_v19 }
 0x154   : > { %v2605_v35 = vpop.permute.xlu0 %2604 }
 0x155   : > { %v1478_v36 = vpop.permute.xlu1 %1477  ;;  %v2606_v37 = vunpack.i.l.bf16 %v2605_v35  ;;  %v2607_v9 = vunpack.i.h.bf16 %v2605_v35 }
 0x156   : > { %1595 = vmatpush1.bf16.msra.mxu0 %v1522_v34  ;;  %2393 = vmatpush1.bf16.msra.mxu1 %v1522_v34  ;;  %v1526_v63 = vsel %vm1513_vm12, %v1478_v36, %v1480_v33 }
 0x157   : > { %1240 = vmatmul.mubr.bf16.gmra.mrb[16].mxu0 %v2652_v29  ;;  %1596 = vmatprep.subr.bf16.mxu0 %v1525_v30  ;;  %v1527_v56 = vsel %vm1513_vm12, %v1480_v33, %v2606_v37 }
 0x158   : > { %2382 = vmatprep.subr.bf16.mxu1 %v1525_v30  ;;  %v1486_v61 = vpop.permute.xlu0 %1485  ;;  %2255 = vmatprep.mubr.msk.bf16.mxu0 %vm776_vm10, %v2656_v40 }
 0x159   : > { %v1484_v7 = vpop.permute.xlu1 %1483  ;;  %v1529_v3 = vsel %vm1513_vm12, %v1486_v61, %v2607_v9 }
 0x15a   : > { %1597 = vmatpush1.bf16.msra.mxu0 %v1524_v62  ;;  %2394 = vmatpush1.bf16.msra.mxu1 %v1524_v62  ;;  %v1528_v0 = vsel %vm1513_vm12, %v1484_v7, %v1486_v61 }
 0x15b   : > { %1598 = vmatprep.subr.bf16.mxu0 %v1527_v56  ;;  %2383 = vmatprep.subr.bf16.mxu1 %v1527_v56 }
 0x15c   : > { %v1492_v59 = vpop.permute.xlu0 %1491 }
 0x15d   : > { %v2610_v1 = vpop.permute.xlu1 %2609 }
 0x15e   : > { %v2611_v2 = vunpack.i.l.bf16 %v2610_v1  ;;  %1599 = vmatpush1.bf16.msra.mxu0 %v1526_v63  ;;  %2395 = vmatpush1.bf16.msra.mxu1 %v1526_v63  ;;  %v2612_v6 = vunpack.i.h.bf16 %v2610_v1 }
 0x15f   : > { %1250 = vmatmul.mubr.bf16.gmra.mrb[20].mxu0 %v2658_v57  ;;  %1600 = vmatprep.subr.bf16.mxu0 %v1529_v3 }
 0x160   : > { %v1490_v4 = vpop.permute.xlu0 %1489  ;;  %2384 = vmatprep.subr.bf16.mxu1 %v1529_v3  ;;  %2256 = vmatprep.mubr.msk.bf16.mxu0 %vm776_vm10, %v2662_v60  ;;  %v1531_v8 = vsel %vm1513_vm12, %v1492_v59, %v2611_v2 }
 0x161   : > { %v1498_v5 = vpop.permute.xlu1 %1497  ;;  %v1530_v12 = vsel %vm1513_vm12, %v1490_v4, %v1492_v59 }
 0x162   : > { %1601 = vmatpush1.bf16.msra.mxu0 %v1528_v0  ;;  %2396 = vmatpush1.bf16.msra.mxu1 %v1528_v0  ;;  %v1533_v10 = vsel %vm1513_vm12, %v1498_v5, %v2612_v6 }
 0x163   : > { %1602 = vmatprep.subr.bf16.mxu0 %v1531_v8  ;;  %2385 = vmatprep.subr.bf16.mxu1 %v1531_v8 }
 0x164   : > { %v1496_v11 = vpop.permute.xlu0 %1495 }
 0x165   : > { %v1504_v13 = vpop.permute.xlu1 %1503  ;;  %v1532_v15 = vsel %vm1513_vm12, %v1496_v11, %v1498_v5 }
 0x166   : > { %1603 = vmatpush1.bf16.msra.mxu0 %v1530_v12  ;;  %2397 = vmatpush1.bf16.msra.mxu1 %v1530_v12 }
 0x167   : > { %1260 = vmatmul.mubr.bf16.gmra.mrb[24].mxu0 %v2664_v52  ;;  %1604 = vmatprep.subr.bf16.mxu0 %v1533_v10 }
 0x168   : > { %2386 = vmatprep.subr.bf16.mxu1 %v1533_v10  ;;  %v1506_v14 = vpop.permute.xlu0 %1505  ;;  %2257 = vmatprep.mubr.msk.bf16.mxu0 %vm776_vm10, %v2668_v58 }
 0x169   : > { %v1502_v18 = vpop.permute.xlu1 %1501  ;;  %v1535_v20 = vsel %vm1513_vm12, %v1504_v13, %v1506_v14 }
 0x16a   : > { %1605 = vmatpush1.bf16.msra.mxu0 %v1532_v15  ;;  %2398 = vmatpush1.bf16.msra.mxu1 %v1532_v15  ;;  %v1534_v47 = vsel %vm1513_vm12, %v1502_v18, %v1504_v13 }
 0x16b   : > { %1606 = vmatprep.subr.bf16.mxu0 %v1535_v20  ;;  %2387 = vmatprep.subr.bf16.mxu1 %v1535_v20 }
 0x16c   : > { %v1510_v22 = vpop.permute.xlu0 %1509 }
 0x16d   : > { %v1512_v24 = vpop.permute.xlu1 %1511 }
 0x16e   : > { %1607 = vmatpush1.bf16.msra.mxu0 %v1534_v47  ;;  %2399 = vmatpush1.bf16.msra.mxu1 %v1534_v47  ;;  %v1537_v25 = vsel %vm1513_vm12, %v1510_v22, %v1512_v24 }
 0x16f   : > { %1270 = vmatmul.mubr.bf16.gmra.mrb[28].mxu0 %v2670_v21  ;;  %1608 = vmatprep.subr.bf16.mxu0 %v1537_v25 }
 0x170   : > { %2388 = vmatprep.subr.bf16.mxu1 %v1537_v25  ;;  %v1508_v26 = vpop.permute.xlu0 %1507  ;;  %2290 = vmatprep.mubr.msk.bf16.mxu0 %vm776_vm10, %v2676_v43 }
 0x171   : > { %v1536_v27 = vsel %vm1513_vm12, %v1508_v26, %v1510_v22 }
 0x172   : > { %1609 = vmatpush1.bf16.msra.mxu0 %v1536_v27  ;;  %2400 = vmatpush1.bf16.msra.mxu1 %v1536_v27 }
 0x175   : > { %1659 = vmatmul.mubr.bf16.vlgmr.msra.gmra.mrb[32].mxu1 %v2671_v28 }
 0x176   : > { %2295 = vmatprep.mubr.msk.bf16.mxu1 %vm776_vm10, %v2677_v42 }
 0x177   : > { %1619 = vmatmul.mubr.bf16.vlgmr.msra.gmra.mrb[0].mxu0 %v2674_v44 }
 0x178   : > { %2291 = vmatprep.mubr.msk.bf16.mxu0 %vm776_vm10, %v2679_v31 }
 0x17d   : > { %1669 = vmatmul.mubr.bf16.gmra.mrb[36].mxu1 %v2681_v32 }
 0x17e   : > { %2296 = vmatprep.mubr.msk.bf16.mxu1 %vm776_vm10, %v2683_v41  ;;  %v1734_v18 = vpop.permute.xlu1 %1733 }
 0x17f   : > { %1629 = vmatmul.mubr.bf16.gmra.mrb[4].mxu0 %v2682_v45 }
 0x180   : > { %2292 = vmatprep.mubr.msk.bf16.mxu0 %vm776_vm10, %v2685_v46 }
 0x181   : > { %v1739_v26 = vpop.permute.xlu0 %1738 }
 0x182   : > { %v3571_v28 = vpop.permute.xlu1 %1743 }
 0x185   : > { %1679 = vmatmul.mubr.bf16.gmra.mrb[40].mxu1 %v2687_v48  ;;  %v3575_v32 = vpop.permute.xlu0 %1753 }
 0x186   : > { %2297 = vmatprep.mubr.msk.bf16.mxu1 %vm776_vm10, %v2689_v49  ;;  %v3579_v46 = vpop.permute.xlu1 %1748 }
 0x187   : > { %1639 = vmatmul.mubr.bf16.gmra.mrb[8].mxu0 %v2688_v50 }
 0x188   : > { %2293 = vmatprep.mubr.msk.bf16.mxu0 %vm776_vm10, %v2691_v23 }
 0x18d   : > { %1689 = vmatmul.mubr.bf16.gmra.mrb[44].mxu1 %v2693_v17  ;;  %v3585_v17 = vpop.permute.xlu0 %1763 }
 0x18f   : > { %1649 = vmatmul.mubr.bf16.gmra.mrb[12].mxu0 %v2694_v51  ;;  %v3587_v51 = vpop.permute.xlu1 %1758 }
 0x194   : > { %v3531_v53 = vpop.f32.mrb[0].mxu1 }
 0x195   : > { %v3533_v54 = vpop.f32.mrb[1].mxu1 }
 0x196   : > { %v3535_v55 = vpop.f32.mrb[2].mxu1 }
 0x197   : > { %v3537_v39 = vpop.f32.mrb[3].mxu1 }
 0x19c   : > { %v3539_v38 = vpop.f32.mrb[4].mxu1 }
 0x19d   : > { %v3541_v33 = vpop.f32.mrb[5].mxu1 }
 0x19e   : > { %v3543_v16 = vpop.f32.mrb[6].mxu1 }
 0x19f   : > { %v3545_v19 = vpop.f32.mrb[7].mxu1 }
 0x1a4   : > { %v3547_v29 = vpop.f32.mrb[8].mxu1 }
 0x1a5   : > { %v3549_v35 = vpop.f32.mrb[9].mxu1 }
 0x1a6   : > { %v3551_v40 = vpop.f32.mrb[10].mxu1 }
 0x1a7   : > { %v3553_v34 = vpop.f32.mrb[11].mxu1 }
 0x1ac   : > { %v3555_v36 = vpop.f32.mrb[12].mxu1 }
 0x1ad   : > { %v3557_v37 = vpop.f32.mrb[13].mxu1 }
 0x1ae   : > { %v3559_v30 = vpop.f32.mrb[14].mxu1 }
 0x1af   : > { %v3561_v61 = vpop.f32.mrb[15].mxu1 }
 0x1b4   : > { %v875_v62 = vpop.f32.mrb[16].mxu1 }
 0x1b5   : > { %v877_v7 = vpop.f32.mrb[17].mxu1 }
 0x1b6   : > { %v879_v9 = vpop.f32.mrb[18].mxu1 }
 0x1b7   : > { %v881_v56 = vpop.f32.mrb[19].mxu1 }
 0x1bc   : > { %v885_v57 = vpop.f32.mrb[20].mxu1 }
 0x1bd   : > { %v887_v59 = vpop.f32.mrb[21].mxu1 }
 0x1be   : > { %v889_v60 = vpop.f32.mrb[22].mxu1 }
 0x1bf   : > { %v891_v63 = vpop.f32.mrb[23].mxu1 }
 0x1c4   : > { %v895_v1 = vpop.f32.mrb[24].mxu1 }
 0x1c5   : > { %v897_v2 = vpop.f32.mrb[25].mxu1 }
 0x1c6   : > { %v899_v3 = vpop.f32.mrb[26].mxu1 }
 0x1c7   : > { %v901_v4 = vpop.f32.mrb[27].mxu1 }
 0x1cc   : > { %v905_v0 = vpop.f32.mrb[28].mxu1 }
 0x1cd   : > { %v907_v5 = vpop.f32.mrb[29].mxu1 }
 0x1ce   : > { %v909_v6 = vpop.f32.mrb[30].mxu1 }
 0x1cf   : > { %v911_v8 = vpop.f32.mrb[31].mxu1 }
 0x22a   : > { %v1241_v52 = vpop.f32.mrb[16].mxu0 }
 0x22b   : > { %v1242_v11 = vadd.f32 %v1241_v52, %v875_v62  ;;  %v1243_v58 = vpop.f32.mrb[17].mxu0 }
 0x22c   : > { %v1244_v12 = vadd.f32 %v1243_v58, %v877_v7  ;;  %v1245_v13 = vpop.f32.mrb[18].mxu0 }
 0x22d   : > { %v1246_v10 = vadd.f32 %v1245_v13, %v879_v9  ;;  %v1247_v14 = vpop.f32.mrb[19].mxu0 }
 0x22e   : > { %v1248_v15 = vadd.f32 %v1247_v14, %v881_v56 }
 0x232   : > { %v1251_v20 = vpop.f32.mrb[20].mxu0 }
 0x233   : > { %v3563_v21 = vadd.f32 %v1251_v20, %v885_v57  ;;  %v1253_v22 = vpop.f32.mrb[21].mxu0 }
 0x234   : > { %v3565_v43 = vadd.f32 %v1253_v22, %v887_v59  ;;  %v1255_v47 = vpop.f32.mrb[22].mxu0 }
 0x235   : > { %v3567_v24 = vadd.f32 %v1255_v47, %v889_v60  ;;  %v1257_v25 = vpop.f32.mrb[23].mxu0 }
 0x236   : > { %v3569_v27 = vadd.f32 %v1257_v25, %v891_v63 }
 0x23a   : > { %v1261_v42 = vpop.f32.mrb[24].mxu0 }
 0x23b   : > { %v3573_v44 = vadd.f32 %v1261_v42, %v895_v1  ;;  %v1263_v31 = vpop.f32.mrb[25].mxu0  ;;  %v1774_v1 = vpop.permute.xlu0 %1773 }
 0x23c   : > { %v3577_v41 = vadd.f32 %v1263_v31, %v897_v2  ;;  %v1265_v45 = vpop.f32.mrb[26].mxu0  ;;  %v3597_v2 = vpop.permute.xlu1 %1768 }
 0x23d   : > { %v3581_v48 = vadd.f32 %v1265_v45, %v899_v3  ;;  %v1267_v49 = vpop.f32.mrb[27].mxu0 }
 0x23e   : > { %v3583_v50 = vadd.f32 %v1267_v49, %v901_v4 }
 0x242   : > { %v1271_v23 = vpop.f32.mrb[28].mxu0 }
 0x243   : > { %v3589_v62 = vadd.f32 %v1271_v23, %v905_v0  ;;  %v1273_v7 = vpop.f32.mrb[29].mxu0 }
 0x244   : > { %v3591_v9 = vadd.f32 %v1273_v7, %v907_v5  ;;  %v1275_v56 = vpop.f32.mrb[30].mxu0 }
 0x245   : > { %v3593_v57 = vadd.f32 %v1275_v56, %v909_v6  ;;  %v1277_v59 = vpop.f32.mrb[31].mxu0 }
 0x246   : > { %v3595_v60 = vadd.f32 %v1277_v59, %v911_v8  ;;  %v1784_v59 = vpop.permute.xlu0 %1783 }
 0x248   : > { %v1660_v63 = vpop.f32.mrb[32].mxu1 }
 0x249   : > { %v1715_v3 = vadd.f32 %v1660_v63, %v1242_v11  ;;  %v1662_v4 = vpop.f32.mrb[33].mxu1 }
 0x24a   : > { %v1620_v52 = vpop.f32.mrb[0].mxu0  ;;  %v1716_v58 = vadd.f32 %v1662_v4, %v1244_v12  ;;  %v1664_v13 = vpop.f32.mrb[34].mxu1 }
 0x24b   : > { %v2401_v0 = vadd.f32 %v1620_v52, %v3531_v53  ;;  %v1827_v14 = vadd.f32 %v1774_v1, %v1715_v3  ;;  %v1622_v5 = vpop.f32.mrb[1].mxu0  ;;  %v1717_v20 = vadd.f32 %v1664_v13, %v1246_v10  ;;  %v1666_v22 = vpop.f32.mrb[35].mxu1 }
 0x24c   : > { %v1828_v6 = vadd.f32 %v1774_v1, %v1716_v58  ;;  %v2402_v47 = vadd.f32 %v1622_v5, %v3533_v54  ;;  %v1624_v8 = vpop.f32.mrb[2].mxu0  ;;  %v1718_v25 = vadd.f32 %v1666_v22, %v1248_v15  ;;  %v1779_v53 = vpop.permute.xlu1 %1778 }
 0x24d   : > { %v1811_v42 = vadd.f32 %v2401_v0, %v1734_v18  ;;  %v2403_v31 = vadd.f32 %v1624_v8, %v3535_v55  ;;  %v1626_v45 = vpop.f32.mrb[3].mxu0  ;;  %2695 = vtanh.f32 %v1827_v14  ;;  %v1829_v63 = vadd.f32 %v1779_v53, %v1717_v20 }
 0x24e   : > { %v1812_v11 = vadd.f32 %v2402_v47, %v1734_v18  ;;  %v2404_v49 = vadd.f32 %v1626_v45, %v3537_v39  ;;  %2697 = vtanh.f32 %v1828_v6  ;;  %v1830_v55 = vadd.f32 %v1779_v53, %v1718_v25 }
 0x24f   : > { %v2298_v12 = vmul.f32 -1.442695, %v1811_v42  ;;  %v1813_v23 = vadd.f32 %v2403_v31, %v1739_v26 }
 0x250   : > { %v2299_v7 = vmul.f32 -1.442695, %v1812_v11  ;;  %v1814_v10 = vadd.f32 %v2404_v49, %v1739_v26  ;;  %v1670_v56 = vpop.f32.mrb[36].mxu1  ;;  %v1789_v25 = vpop.permute.xlu1 %1788 }
 0x251   : > { %2699 = vpow2.f32 %v2298_v12  ;;  %v2300_v54 = vmul.f32 -1.442695, %v1813_v23  ;;  %v1719_v15 = vadd.f32 %v1670_v56, %v3563_v21  ;;  %v1672_v1 = vpop.f32.mrb[37].mxu1  ;;  %v1794_v49 = vpop.permute.xlu0 %1793 }
 0x252   : > { %2701 = vpow2.f32 %v2299_v7  ;;  %v2301_v18 = vmul.f32 -1.442695, %v1814_v10  ;;  %v1630_v3 = vpop.f32.mrb[4].mxu0  ;;  %v1720_v39 = vadd.f32 %v1672_v1, %v3565_v43  ;;  %v1674_v4 = vpop.f32.mrb[38].mxu1 }
 0x253   : > { %2703 = vpow2.f32 %v2300_v54  ;;  %v2405_v52 = vadd.f32 %v1630_v3, %v3539_v38  ;;  %v1831_v58 = vadd.f32 %v1784_v59, %v1719_v15  ;;  %v1632_v26 = vpop.f32.mrb[5].mxu0  ;;  %v1721_v13 = vadd.f32 %v1674_v4, %v3567_v24  ;;  %v1676_v0 = vpop.f32.mrb[39].mxu1 }
 0x254   : > { %2705 = vpow2.f32 %v2301_v18  ;;  %v1832_v14 = vadd.f32 %v1784_v59, %v1720_v39  ;;  %v2406_v21 = vadd.f32 %v1632_v26, %v3541_v33  ;;  %v1634_v5 = vpop.f32.mrb[6].mxu0  ;;  %v1722_v20 = vadd.f32 %v1676_v0, %v3569_v27 }
 0x255   : > { %2707 = vtanh.f32 %v1829_v63  ;;  %v1815_v22 = vadd.f32 %v2405_v52, %v3571_v28  ;;  %v2407_v43 = vadd.f32 %v1634_v5, %v3543_v16  ;;  %v1636_v6 = vpop.f32.mrb[7].mxu0  ;;  %v1833_v45 = vadd.f32 %v1789_v25, %v1721_v13 }
 0x256   : > { %2709 = vtanh.f32 %v1830_v55  ;;  %v1816_v38 = vadd.f32 %v2406_v21, %v3571_v28  ;;  %v2408_v47 = vadd.f32 %v1636_v6, %v3545_v19  ;;  %v1834_v13 = vadd.f32 %v1789_v25, %v1722_v20 }
 0x257   : > { %v2302_v24 = vmul.f32 -1.442695, %v1815_v22  ;;  %2711 = vtanh.f32 %v1831_v58  ;;  %v1817_v8 = vadd.f32 %v2407_v43, %v3579_v46  ;;  %v3615_v31 = vpop.eup %2695 }
 0x258   : > { %2713 = vtanh.f32 %v1832_v14  ;;  %v2303_v33 = vmul.f32 -1.442695, %v1816_v38  ;;  %v1818_v27 = vadd.f32 %v2408_v47, %v3579_v46  ;;  %v1680_v42 = vpop.f32.mrb[40].mxu1  ;;  %v3618_v19 = vpop.eup %2697 }
 0x259   : > { %2715 = vpow2.f32 %v2302_v24  ;;  %v2304_v16 = vmul.f32 -1.442695, %v1817_v8  ;;  %v1723_v11 = vadd.f32 %v1680_v42, %v3573_v44  ;;  %v1682_v28 = vpop.f32.mrb[41].mxu1 }
 0x25a   : > { %2717 = vpow2.f32 %v2303_v33  ;;  %v2305_v12 = vmul.f32 -1.442695, %v1818_v27  ;;  %v1640_v23 = vpop.f32.mrb[8].mxu0  ;;  %v1724_v53 = vadd.f32 %v1682_v28, %v3577_v41  ;;  %v1684_v7 = vpop.f32.mrb[42].mxu1 }
 0x25b   : > { %v2700_v10 = vpop.eup %2699  ;;  %2719 = vpow2.f32 %v2304_v16  ;;  %v2409_v46 = vadd.f32 %v1640_v23, %v3547_v29  ;;  %v1642_v56 = vpop.f32.mrb[9].mxu0  ;;  %v3623_v59 = vadd.f32 %v1684_v7, %v3581_v48  ;;  %v1835_v15 = vadd.f32 %v1794_v49, %v1723_v11 }
 0x25c   : > { %v1686_v54 = vpop.f32.mrb[43].mxu1  ;;  %v2702_v44 = vpop.eup %2701  ;;  %v1867_v63 = vadd.f32 1.0, %v2700_v10  ;;  %2721 = vpow2.f32 %v2305_v12  ;;  %v2410_v1 = vadd.f32 %v1642_v56, %v3549_v35  ;;  %v1836_v14 = vadd.f32 %v1794_v49, %v1724_v53 }
 0x25d   : > { %v1644_v55 = vpop.f32.mrb[10].mxu0  ;;  %v2704_v18 = vpop.eup %2703  ;;  %v1868_v3 = vadd.f32 1.0, %v2702_v44  ;;  %2723 = vtanh.f32 %v1833_v45  ;;  %v1819_v41 = vadd.f32 %v2409_v46, %v3575_v32  ;;  %v2314_v21 = vmul.f32 -1.442695, %v1835_v15 }
 0x25e   : > { %v2411_v39 = vadd.f32 %v1644_v55, %v3551_v40  ;;  %v1646_v29 = vpop.f32.mrb[11].mxu0  ;;  %v2706_v4 = vpop.eup %2705  ;;  %2725 = vrcp.f32 %v1867_v63  ;;  %v1869_v48 = vadd.f32 1.0, %v2704_v18  ;;  %v1820_v52 = vadd.f32 %v2410_v1, %v3575_v32 }
 0x25f   : > { %v3629_v58 = vpop.eup %2707  ;;  %2727 = vrcp.f32 %v1868_v3  ;;  %v1870_v26 = vadd.f32 1.0, %v2706_v4  ;;  %v2306_v35 = vmul.f32 -1.442695, %v1819_v41  ;;  %v1726_v5 = vadd.f32 %v1686_v54, %v3583_v50  ;;  %v1799_v7 = vpop.permute.xlu1 %1798 }
 0x260   : > { %v3631_v0 = vpop.eup %2709  ;;  %2729 = vrcp.f32 %v1869_v48  ;;  %v1690_v40 = vpop.f32.mrb[44].mxu1  ;;  %v2307_v43 = vmul.f32 -1.442695, %v1820_v52  ;;  %v2412_v32 = vadd.f32 %v1646_v29, %v3553_v34  ;;  %v1821_v20 = vadd.f32 %v2411_v39, %v3587_v51 }
 0x261   : > { %v3634_v22 = vpop.eup %2711  ;;  %2731 = vrcp.f32 %v1870_v26  ;;  %v1727_v6 = vadd.f32 %v1690_v40, %v3589_v62  ;;  %v1692_v38 = vpop.f32.mrb[45].mxu1  ;;  %v2315_v28 = vmul.f32 -1.442695, %v1836_v14  ;;  %v1837_v56 = vadd.f32 %v1799_v7, %v3623_v59 }
 0x262   : > { %v3638_v47 = vpop.eup %2713  ;;  %2733 = vpow2.f32 %v2306_v35  ;;  %v1650_v24 = vpop.f32.mrb[12].mxu0  ;;  %v3642_v8 = vadd.f32 %v1692_v38, %v3591_v9  ;;  %v1822_v49 = vadd.f32 %v2412_v32, %v3587_v51  ;;  %v2308_v53 = vmul.f32 -1.442695, %v1821_v20 }
 0x263   : > { %v1694_v50 = vpop.f32.mrb[46].mxu1  ;;  %v2716_v33 = vpop.eup %2715  ;;  %2735 = vtanh.f32 %v1834_v13  ;;  %v2413_v25 = vadd.f32 %v1650_v24, %v3555_v36  ;;  %v2316_v52 = vmul.f32 -1.442695, %v1837_v56 }
 0x264   : > { %v1652_v27 = vpop.f32.mrb[13].mxu0  ;;  %v1696_v42 = vpop.f32.mrb[47].mxu1  ;;  %v1871_v16 = vadd.f32 1.0, %v2716_v33  ;;  %2737 = vpow2.f32 %v2314_v21  ;;  %v3650_v63 = vadd.f32 %v1694_v50, %v3593_v57  ;;  %v2309_v18 = vmul.f32 -1.442695, %v1822_v49 }
 0x265   : > { %v2718_v34 = vpop.eup %2717  ;;  %v1654_v62 = vpop.f32.mrb[14].mxu0  ;;  %2739 = vpow2.f32 %v2307_v43  ;;  %v1823_v36 = vadd.f32 %v2413_v25, %v3585_v17  ;;  %v2414_v54 = vadd.f32 %v1652_v27, %v3557_v37  ;;  %v3654_v15 = vadd.f32 %v1696_v42, %v3595_v60  ;;  %v1995_v42 = vld [vmem:[%s3686_s8] sm:$0xff] }
 0x266   : > { %v2720_v45 = vpop.eup %2719  ;;  %v1872_v11 = vadd.f32 1.0, %v2718_v34  ;;  %v1656_v12 = vpop.f32.mrb[15].mxu0  ;;  %2741 = vrcp.f32 %v1871_v16  ;;  %v2415_v51 = vadd.f32 %v1654_v62, %v3559_v30  ;;  %v1838_v60 = vadd.f32 %v1799_v7, %v1726_v5 }
 0x267   : > { %v2722_v9 = vpop.eup %2721  ;;  %v1873_v23 = vadd.f32 1.0, %v2720_v45  ;;  %v2416_v59 = vadd.f32 %v1656_v12, %v3561_v61  ;;  %v2310_v57 = vmul.f32 -1.442695, %v1823_v36  ;;  %v1804_v39 = vpop.permute.xlu0 %1803 }
 0x268   : > { %v2724_v10 = vpop.eup %2723  ;;  %2743 = vrcp.f32 %v1872_v11  ;;  %v1874_v46 = vadd.f32 1.0, %v2722_v9  ;;  %v1839_v4 = vadd.f32 %v1804_v39, %v1727_v6  ;;  %v2317_v35 = vmul.f32 -1.442695, %v1838_v60  ;;  %v1809_v34 = vpop.permute.xlu1 %1808 }
 0x269   : > { %v2726_v44 = vpop.eup %2725  ;;  %2745 = vrcp.f32 %v1873_v23  ;;  %v1840_v25 = vadd.f32 %v1804_v39, %v3642_v8  ;;  %v1826_v16 = vadd.f32 %v2416_v59, %v3597_v2  ;;  %v1996_v23 = vld [vmem:[%s3686_s8 + $0x8] sm:$0xff]  ;;  %v1998_v39 = vld [vmem:[%s3686_s8 + $0x18] sm:$0xff] }
 0x26a   : > { %v2728_v1 = vpop.eup %2727  ;;  %v3657_v55 = vmul.f32 %v2726_v44, %v3615_v31  ;;  %2747 = vrcp.f32 %v1874_v46  ;;  %v2318_v5 = vmul.f32 -1.442695, %v1839_v4  ;;  %v1999_v4 = vld [vmem:[%s3686_s8 + $0x20] sm:$0xff] }
 0x26b   : > { %v2730_v3 = vpop.eup %2729  ;;  %v3661_v37 = vmul.f32 %v2728_v1, %v3618_v19  ;;  %2749 = vpow2.f32 %v2308_v53  ;;  %v1824_v19 = vadd.f32 %v2414_v54, %v3585_v17  ;;  %v2319_v9 = vmul.f32 -1.442695, %v1840_v25  ;;  %v1997_v1 = vld [vmem:[%s3686_s8 + $0x10] sm:$0xff] }
 0x26c   : > { %v2732_v41 = vpop.eup %2731  ;;  %v3664_v30 = vmul.f32 %v2730_v3, %v3629_v58  ;;  %2751 = vpow2.f32 %v2315_v28  ;;  %v1825_v58 = vadd.f32 %v2415_v51, %v3597_v2  ;;  %v1841_v28 = vadd.f32 %v1809_v34, %v3650_v63 }
 0x26d   : > { %v2734_v29 = vpop.eup %2733  ;;  %v3667_v31 = vmul.f32 %v2732_v41, %v3631_v0  ;;  %2753 = vpow2.f32 %v2309_v18  ;;  %v2311_v43 = vmul.f32 -1.442695, %v1824_v19  ;;  %v2313_v2 = vmul.f32 -1.442695, %v1826_v16 }
 0x26e   : > { %v2736_v61 = vpop.eup %2735  ;;  %v1915_v48 = vadd.f32 1.0, %v2734_v29  ;;  %2755 = vpow2.f32 %v2310_v57  ;;  %v2312_v6 = vmul.f32 -1.442695, %v1825_v58  ;;  %v1842_v18 = vadd.f32 %v1809_v34, %v3654_v15 }
 0x26f   : > { %v2738_v26 = vpop.eup %2737 }
 0x270   : > { %v2740_v13 = vpop.eup %2739  ;;  %2757 = vrcp.f32 %v1915_v48  ;;  %v1971_v33 = vadd.f32 1.0, %v2738_v26 }
 0x271   : > { %v2742_v14 = vpop.eup %2741  ;;  %v1916_v21 = vadd.f32 1.0, %v2740_v13  ;;  %2759 = vpow2.f32 %v2316_v52 }
 0x272   : > { %v2744_v0 = vpop.eup %2743  ;;  %v3675_v40 = vmul.f32 %v2742_v14, %v3634_v22 }
 0x273   : > { %v2746_v17 = vpop.eup %2745  ;;  %v3678_v32 = vmul.f32 %v2744_v0, %v3638_v47  ;;  %2761 = vrcp.f32 %v1916_v21 }
 0x274   : > { %v2748_v38 = vpop.eup %2747  ;;  %v3680_v20 = vmul.f32 %v2746_v17, %v2724_v10  ;;  %2763 = vpow2.f32 %v2317_v35  ;;  %v2320_v10 = vmul.f32 -1.442695, %v1841_v28  ;;  %v2000_v17 = vld [vmem:[%s3686_s8 + $0x28] sm:$0xff] }
 0x275   : > { %v2750_v24 = vpop.eup %2749  ;;  %v3688_v22 = vmul.f32 %v2748_v38, %v2736_v61  ;;  %2765 = vpow2.f32 %v2318_v5 }
 0x276   : > { %v2752_v50 = vpop.eup %2751  ;;  %v1917_v47 = vadd.f32 1.0, %v2750_v24  ;;  %2767 = vpow2.f32 %v2311_v43 }
 0x277   : > { %2769 = vpow2.f32 %v2312_v6  ;;  %v2754_v27 = vpop.eup %2753  ;;  %v1972_v45 = vadd.f32 1.0, %v2752_v50  ;;  %v2001_v50 = vld [vmem:[%s3686_s8 + $0x30] sm:$0xff] }
 0x278   : > { %2771 = vrcp.f32 %v1917_v47  ;;  %v2756_v62 = vpop.eup %2755  ;;  %v1918_v11 = vadd.f32 1.0, %v2754_v27 }
 0x279   : > { %2773 = vrcp.f32 %v1971_v33  ;;  %v1919_v12 = vadd.f32 1.0, %v2756_v62 }
 0x27a   : > { %v2758_v49 = vpop.eup %2757  ;;  %2775 = vrcp.f32 %v1918_v11 }
 0x27b   : > { %v2003_v8 = vmul.f32 %v2758_v49, %v1995_v42  ;;  %v2760_v53 = vpop.eup %2759  ;;  %2777 = vrcp.f32 %v1919_v12 }
 0x27c   : > { %2779 = vrcp.f32 %v1972_v45  ;;  %v1973_v44 = vadd.f32 1.0, %v2760_v53 }
 0x27d   : > { %v2762_v7 = vpop.eup %2761  ;;  %v2019_v36 = vadd.f32 %v3657_v55, %v2003_v8  ;;  %2781 = vpow2.f32 %v2319_v9 }
 0x27e   : > { %v2764_v46 = vpop.eup %2763  ;;  %v2004_v56 = vmul.f32 %v2762_v7, %v1996_v23  ;;  %v2002_v23 = vld [vmem:[%s3686_s8 + $0x38] sm:$0xff] }
 0x27f   : > { %v2766_v54 = vpop.eup %2765  ;;  %2783 = vtanh.f32 %v2019_v36  ;;  %2043 = vst [vmem:[%s3699_s11] sm:$0xff] %v2019_v36  ;;  %v1974_v57 = vadd.f32 1.0, %v2764_v46 }
 0x280   : > { %v2768_v63 = vpop.eup %2767  ;;  %v2020_v51 = vadd.f32 %v3661_v37, %v2004_v56  ;;  %2785 = vpow2.f32 %v2313_v2  ;;  %v2321_v37 = vmul.f32 -1.442695, %v1842_v18  ;;  %v1975_v48 = vadd.f32 1.0, %v2766_v54 }
 0x281   : > { %v2770_v55 = vpop.eup %2769  ;;  %v1920_v59 = vadd.f32 1.0, %v2768_v63  ;;  %2787 = vpow2.f32 %v2320_v10 }
 0x282   : > { %v2772_v3 = vpop.eup %2771  ;;  %2789 = vtanh.f32 %v2020_v51  ;;  %2044 = vst [vmem:[%s3699_s11 + $0x8] sm:$0xff] %v2020_v51  ;;  %v1921_v41 = vadd.f32 1.0, %v2770_v55 }
 0x283   : > { %v2005_v60 = vmul.f32 %v2772_v3, %v1997_v1  ;;  %2791 = vrcp.f32 %v1973_v44  ;;  %v2774_v29 = vpop.eup %2773 }
 0x284   : > { %2793 = vrcp.f32 %v1920_v59  ;;  %v2776_v61 = vpop.eup %2775 }
 0x285   : > { %v2021_v15 = vadd.f32 %v3664_v30, %v2005_v60  ;;  %2795 = vrcp.f32 %v1921_v41  ;;  %v2778_v52 = vpop.eup %2777  ;;  %v2006_v19 = vmul.f32 %v2776_v61, %v1998_v39 }
 0x286   : > { %2797 = vrcp.f32 %v1974_v57  ;;  %v2780_v26 = vpop.eup %2779  ;;  %v2007_v58 = vmul.f32 %v2778_v52, %v1999_v4 }
 0x287   : > { %2799 = vtanh.f32 %v2021_v15  ;;  %2045 = vst [vmem:[%s3699_s11 + $0x10] sm:$0xff] %v2021_v15  ;;  %v2782_v13 = vpop.eup %2781  ;;  %v2022_v35 = vadd.f32 %v3667_v31, %v2006_v19 }
 0x288   : > { %2801 = vpow2.f32 %v2321_v37  ;;  %v2023_v30 = vadd.f32 %v3675_v40, %v2007_v58  ;;  %v1976_v24 = vadd.f32 1.0, %v2782_v13 }
 0x289   : > { %v2784_v14 = vpop.eup %2783  ;;  %2803 = vrcp.f32 %v1975_v48  ;;  %2046 = vst [vmem:[%s3699_s11 + $0x18] sm:$0xff] %v2022_v35 }
 0x28a   : > { %v2786_v21 = vpop.eup %2785  ;;  %v2035_v5 = vmul.f32 %v2784_v14, %v2774_v29  ;;  %2805 = vtanh.f32 %v2022_v35  ;;  %2047 = vst [vmem:[%s3699_s11 + $0x20] sm:$0xff] %v2023_v30 }
 0x28b   : > { %v2788_v0 = vpop.eup %2787  ;;  %2807 = vtanh.f32 %v2023_v30  ;;  %v1922_v31 = vadd.f32 1.0, %v2786_v21 }
 0x28c   : > { %v2790_v43 = vpop.eup %2789  ;;  %2051 = vst [vmem:[%s3716_s14] sm:$0xff] %v2035_v5  ;;  %v1977_v40 = vadd.f32 1.0, %v2788_v0 }
 0x28d   : > { %v2792_v6 = vpop.eup %2791  ;;  %v2036_v38 = vmul.f32 %v2790_v43, %v2780_v26  ;;  %2809 = vrcp.f32 %v1922_v31 }
 0x28e   : > { %v2794_v33 = vpop.eup %2793  ;;  %2811 = vrcp.f32 %v1976_v24 }
 0x28f   : > { %v2796_v47 = vpop.eup %2795  ;;  %2052 = vst [vmem:[%s3716_s14 + $0x8] sm:$0xff] %v2036_v38  ;;  %v2008_v25 = vmul.f32 %v2794_v33, %v2000_v17  ;;  %2813 = vrcp.f32 %v1977_v40 }
 0x290   : > { %v2798_v27 = vpop.eup %2797  ;;  %v2009_v42 = vmul.f32 %v2796_v47, %v2001_v50 }
 0x291   : > { %v2800_v34 = vpop.eup %2799  ;;  %v2024_v16 = vadd.f32 %v3678_v32, %v2008_v25 }
 0x292   : > { %v2802_v62 = vpop.eup %2801  ;;  %v2037_v45 = vmul.f32 %v2800_v34, %v2792_v6  ;;  %v2025_v11 = vadd.f32 %v3680_v20, %v2009_v42 }
 0x293   : > { %v2804_v28 = vpop.eup %2803  ;;  %2815 = vtanh.f32 %v2024_v16  ;;  %2048 = vst [vmem:[%s3699_s11 + $0x28] sm:$0xff] %v2024_v16  ;;  %v1978_v53 = vadd.f32 1.0, %v2802_v62 }
 0x294   : > { %v2806_v49 = vpop.eup %2805  ;;  %2053 = vst [vmem:[%s3716_s14 + $0x10] sm:$0xff] %v2037_v45  ;;  %2817 = vtanh.f32 %v2025_v11  ;;  %2049 = vst [vmem:[%s3699_s11 + $0x30] sm:$0xff] %v2025_v11 }
 0x295   : > { %v2808_v12 = vpop.eup %2807  ;;  %v2038_v9 = vmul.f32 %v2806_v49, %v2798_v27  ;;  %2819 = vrcp.f32 %v1978_v53 }
 0x296   : > { %v2039_v8 = vmul.f32 %v2808_v12, %v2804_v28 }
 0x297   : > { %2054 = vst [vmem:[%s3716_s14 + $0x18] sm:$0xff] %v2038_v9  ;;  %v2810_v32 = vpop.eup %2809 }
 0x298   : > { %2055 = vst [vmem:[%s3716_s14 + $0x20] sm:$0xff] %v2039_v8  ;;  %v2010_v20 = vmul.f32 %v2810_v32, %v2002_v23  ;;  %v2812_v2 = vpop.eup %2811 }
 0x299   : > { %v2814_v36 = vpop.eup %2813 }
 0x29a   : > { %v2026_v7 = vadd.f32 %v3688_v22, %v2010_v20 }
 0x29c   : > { %2821 = vtanh.f32 %v2026_v7  ;;  %2050 = vst [vmem:[%s3699_s11 + $0x38] sm:$0xff] %v2026_v7 }
 0x29d   : > { %v2816_v10 = vpop.eup %2815 }
 0x29e   : > { %v2818_v46 = vpop.eup %2817  ;;  %v2040_v56 = vmul.f32 %v2816_v10, %v2812_v2 }
 0x29f   : > { %v2041_v54 = vmul.f32 %v2818_v46, %v2814_v36  ;;  %v2820_v44 = vpop.eup %2819 }
 0x2a0   : > { %2056 = vst [vmem:[%s3716_s14 + $0x28] sm:$0xff] %v2040_v56 }
 0x2a1   : > { %2057 = vst [vmem:[%s3716_s14 + $0x30] sm:$0xff] %v2041_v54 }
 0x2a6   : > { %v2822_v63 = vpop.eup %2821 }
 0x2a7   : > { %v2042_v51 = vmul.f32 %v2822_v63, %v2820_v44 }
 0x2a9   : > { %2058 = vst [vmem:[%s3716_s14 + $0x38] sm:$0xff] %v2042_v51 }
 0x2aa PF: > { %s17_s21 = sadd.s32 1, %s2829_s21  }
 0x2ab   : > { %p14_p4 = scmp.ge.s32.totalorder %s17_s21, 4  }
 0x2ad   :  { %16 = sbr.rel (!%p14_p4) target bundleno = 1 (0x1), region = 90 }

</bundles_post_ra>
